<compile_context>
chip_gen: v7x
topology: tpu7x:2x2x1
jax: 0.10.0
libtpu: 0.0.40
codegen_flags: <defaults>
</compile_context>

<pallas_src>
import functools

import jax
import jax.numpy as jnp
from jax.experimental import pallas as pl
from jax.experimental.pallas import tpu as pltpu

EPS = 1e-5
LANE = 128
VMEM_LIMIT_BYTES = 48 * 1024 * 1024   # safe on v5e/v6e (128 MiB phys) and v7x (64 MiB phys)


def _ceil_to(v, m):
    return ((v + m - 1) // m) * m


def _pick_bt(B, L, Cp):
    """Batches per grid step: fill the MXU M dim when L is small, bounded by VMEM."""
    best = 1
    for bt in range(1, B + 1):
        if B % bt == 0 and bt * L <= 512 and bt * L * Cp * 4 <= (4 << 20):
            best = bt
    return best


def _im2col_k3(z):
    """(Bt, L, C) -> (Bt*L, 3C) slab for a k=3, padding=1 conv.

    The zero halo is built per batch *before* flattening, so batch boundaries need no
    masking. Call with an already-bf16 input (cast before the slab build).
    """
    Bt, L, C = z.shape
    zero = jnp.zeros((Bt, 1, C), z.dtype)
    prev = jnp.concatenate([zero, z[:, :-1, :]], axis=1)   # row l holds z[l-1]
    nxt = jnp.concatenate([z[:, 1:, :], zero], axis=1)      # row l holds z[l+1]
    return jnp.concatenate([prev, z, nxt], axis=2).reshape(Bt * L, 3 * C)


# ---------------------------------------------------------------------------
# Pass 1: conv1+ReLU -> conv2 -> cross-attention(+skip) -> +residual, plus BN partial stats.
# ---------------------------------------------------------------------------
def _fused_residual_block_kernel(
        x_ref, c_ref,
        w1_ref, b1_ref, w2_ref, b2_ref,
        wq_ref, bq_ref, wc_ref, bc_ref,
        wk_ref, bk_ref, wv_ref, bv_ref, wo_ref, bo_ref,
        pre_ref, stats_ref, *, score_scale):
    f32 = jnp.float32
    cdt = w1_ref.dtype            # MXU operand dtype (bf16); accumulation is f32

    x = x_ref[...]                # (Bt, L, Cp)  residual / conv input (f32)
    c = c_ref[...]                # (Bt, Lc, Ccp)                      (f32)
    Bt, L, Cp = x.shape
    Lc = c.shape[1]

    # ---- conv1 (k=3, pad=1) + ReLU : single im2col matmul over Bt*L rows -------
    slab1 = _im2col_k3(x.astype(cdt))                                    # (Bt*L, 3Cp) bf16
    h = jnp.dot(slab1, w1_ref[...], preferred_element_type=f32) + b1_ref[...]
    h = jnp.maximum(h, 0.0)                                              # (Bt*L, Cp) f32

    # ---- conv2 (k=3, pad=1) -----------------------------------------------------
    slab2 = _im2col_k3(h.reshape(Bt, L, Cp).astype(cdt))
    h = jnp.dot(slab2, w2_ref[...], preferred_element_type=f32) + b2_ref[...]

    # ---- cross attention (1x1 convs == channel matmuls) -------------------------
    h_b = h.astype(cdt)                                                  # cast once, reused
    q = jnp.dot(h_b, wq_ref[...], preferred_element_type=f32) + bq_ref[...]      # (Bt*L, Ep)

    c_b = c.reshape(Bt * Lc, -1).astype(cdt)
    cpj = jnp.dot(c_b, wc_ref[...], preferred_element_type=f32) + bc_ref[...]    # (Bt*Lc, Ep)
    cpj_b = cpj.astype(cdt)                                              # cast once, reused
    k = jnp.dot(cpj_b, wk_ref[...], preferred_element_type=f32) + bk_ref[...]
    v = jnp.dot(cpj_b, wv_ref[...], preferred_element_type=f32) + bv_ref[...]

    qb = q.astype(cdt).reshape(Bt, L, -1)
    kb = k.astype(cdt).reshape(Bt, Lc, -1)
    vb = v.astype(cdt).reshape(Bt, Lc, -1)

    # scores = (q @ k^T) / sqrt(E): contraction over the last dims (no explicit transpose),
    # score scale applied to the f32 scores (not folded into bf16 weights).
    scores = jnp.einsum('bqd,bkd->bqk', qb, kb,
                        preferred_element_type=f32) * score_scale        # (Bt, L, Lc) f32
    scores = scores - jnp.max(scores, axis=-1, keepdims=True)
    p = jnp.exp(scores)
    attn = p * pl.reciprocal(jnp.sum(p, axis=-1, keepdims=True), approx=False)

    ctx = jnp.einsum('bqk,bkd->bqd', attn.astype(cdt), vb,
                     preferred_element_type=f32)                         # (Bt, L, Ep)
    ao = jnp.dot(ctx.reshape(Bt * L, -1).astype(cdt), wo_ref[...],
                 preferred_element_type=f32) + bo_ref[...]               # (Bt*L, Cp)

    # attention skip (+ h) and outer residual (+ x): pre-norm activation (f32).
    pre = (ao + h).reshape(Bt, L, Cp) + x
    pre_ref[...] = pre

    # BatchNorm partial statistics for this grid step (streamed; combined in the wrapper).
    pre2 = pre.reshape(Bt * L, Cp)
    s = jnp.sum(pre2, axis=0, keepdims=True)                             # (1, Cp)
    ss = jnp.sum(pre2 * pre2, axis=0, keepdims=True)                     # (1, Cp)
    stats_ref[...] = jnp.concatenate([s, ss], axis=0)[None]              # (1, 2, Cp)


# ---------------------------------------------------------------------------
# Pass 2: BatchNorm apply (pure elementwise, folded scale/shift).
# ---------------------------------------------------------------------------
def _bn_apply_kernel(pre_ref, scale_ref, shift_ref, o_ref):
    scale = scale_ref[...].reshape(1, 1, -1)
    shift = shift_ref[...].reshape(1, 1, -1)
    o_ref[...] = pre_ref[...] * scale + shift


# ---------------------------------------------------------------------------
# Parameter preparation: pad channel dims to lane width, im2col conv weights,
# cast MXU weights to bf16 (biases / BN params stay f32).
# ---------------------------------------------------------------------------
def prepare_params(params, dim, cond_dim, embed_dim, compute_dtype=jnp.bfloat16):
    Cp = _ceil_to(dim, LANE)
    Ccp = _ceil_to(cond_dim, LANE)
    Ep = _ceil_to(embed_dim, LANE)

    def pad2(a, rows, cols):
        return jnp.pad(a, ((0, rows - a.shape[0]), (0, cols - a.shape[1])))

    def conv_w(w):                      # (3, Cin, Cout) -> (3*Cp, Cp) im2col layout
        wp = jnp.pad(w, ((0, 0), (0, Cp - w.shape[1]), (0, Cp - w.shape[2])))
        return wp.reshape(3 * Cp, Cp).astype(compute_dtype)

    return {
        "dim": dim, "cond_dim": cond_dim, "embed_dim": embed_dim,
        "Cp": Cp, "Ccp": Ccp, "Ep": Ep,
        "w1": conv_w(params["w1"]), "b1": pad2(params["b1"], 1, Cp),
        "w2": conv_w(params["w2"]), "b2": pad2(params["b2"], 1, Cp),
        "wq": pad2(params["wq"], Cp, Ep).astype(compute_dtype), "bq": pad2(params["bq"], 1, Ep),
        "wc": pad2(params["wc"], Ccp, Ep).astype(compute_dtype), "bc": pad2(params["bc"], 1, Ep),
        "wk": pad2(params["wk"], Ep, Ep).astype(compute_dtype), "bk": pad2(params["bk"], 1, Ep),
        "wv": pad2(params["wv"], Ep, Ep).astype(compute_dtype), "bv": pad2(params["bv"], 1, Ep),
        "wo": pad2(params["wo"], Ep, Cp).astype(compute_dtype), "bo": pad2(params["bo"], 1, Cp),
        "gamma": pad2(params["gamma"], 1, Cp),
        "beta": pad2(params["beta"], 1, Cp),
    }


# ---------------------------------------------------------------------------
# Forward wrapper.
# ---------------------------------------------------------------------------
def residual_block_forward(x_ncl, cond_ncl, pp):
    f32 = jnp.float32
    B, dim, L = x_ncl.shape
    _, cond_dim, Lc = cond_ncl.shape
    Cp, Ccp = pp["Cp"], pp["Ccp"]

    # NCL -> NLC + channel pad to the 128-lane width (single tiny layout pass).
    x_p = jnp.pad(jnp.transpose(x_ncl, (0, 2, 1)), ((0, 0), (0, 0), (0, Cp - dim)))
    c_p = jnp.pad(jnp.transpose(cond_ncl, (0, 2, 1)), ((0, 0), (0, 0), (0, Ccp - cond_dim)))

    Bt = _pick_bt(B, L, Cp)
    G = B // Bt
    score_scale = 1.0 / float(pp["embed_dim"]) ** 0.5

    def full2d(a):
        return pl.BlockSpec(a.shape, lambda i: (0, 0))

    kern = functools.partial(_fused_residual_block_kernel, score_scale=score_scale)

    # ---- Pass 1: fused compute + streaming BN partial statistics ---------------
    pre, stats = pl.pallas_call(
        kern,
        out_shape=(jax.ShapeDtypeStruct((B, L, Cp), f32),
                   jax.ShapeDtypeStruct((G, 2, Cp), f32)),
        grid=(G,),
        in_specs=[
            pl.BlockSpec((Bt, L, Cp), lambda i: (i, 0, 0)),      # x (Bt batches per step)
            pl.BlockSpec((Bt, Lc, Ccp), lambda i: (i, 0, 0)),    # cond
            full2d(pp["w1"]), full2d(pp["b1"]),
            full2d(pp["w2"]), full2d(pp["b2"]),
            full2d(pp["wq"]), full2d(pp["bq"]),
            full2d(pp["wc"]), full2d(pp["bc"]),
            full2d(pp["wk"]), full2d(pp["bk"]),
            full2d(pp["wv"]), full2d(pp["bv"]),
            full2d(pp["wo"]), full2d(pp["bo"]),
        ],
        out_specs=(pl.BlockSpec((Bt, L, Cp), lambda i: (i, 0, 0)),
                   pl.BlockSpec((1, 2, Cp), lambda i: (i, 0, 0))),
        compiler_params=pltpu.CompilerParams(
            dimension_semantics=("parallel",),
            vmem_limit_bytes=VMEM_LIMIT_BYTES),
    )(x_p, c_p,
      pp["w1"], pp["b1"], pp["w2"], pp["b2"],
      pp["wq"], pp["bq"], pp["wc"], pp["bc"],
      pp["wk"], pp["bk"], pp["wv"], pp["bv"], pp["wo"], pp["bo"])

    # ---- Combine tiny per-step stats and fold BN into scale/shift (f32) --------
    tot = jnp.sum(stats, axis=0)                              # (2, Cp)
    n = float(B * L)
    mean = tot[0] / n
    var = jnp.maximum(tot[1] / n - mean * mean, 0.0)          # biased variance (training mode)
    inv = jax.lax.rsqrt(var + EPS)
    scale = (pp["gamma"] * inv).astype(f32)                   # (1, Cp)
    shift = (pp["beta"] - mean[None, :] * (pp["gamma"] * inv)).astype(f32)

    # ---- Pass 2: cheap elementwise BN apply -------------------------------------
    out_p = pl.pallas_call(
        _bn_apply_kernel,
        out_shape=jax.ShapeDtypeStruct((B, L, Cp), f32),
        grid=(G,),
        in_specs=[
            pl.BlockSpec((Bt, L, Cp), lambda i: (i, 0, 0)),
            pl.BlockSpec((1, Cp), lambda i: (0, 0)),
            pl.BlockSpec((1, Cp), lambda i: (0, 0)),
        ],
        out_specs=pl.BlockSpec((Bt, L, Cp), lambda i: (i, 0, 0)),
        compiler_params=pltpu.CompilerParams(
            dimension_semantics=("parallel",),
            vmem_limit_bytes=VMEM_LIMIT_BYTES),
    )(pre, scale, shift)

    return jnp.transpose(out_p[:, :, :dim], (0, 2, 1))        # back to (B, dim, L)


# ---------------------------------------------------------------------------
# Parameter construction (PyTorch-equivalent layouts, random init for the demo).
# ---------------------------------------------------------------------------
def make_params(key, dim, cond_dim, embed_dim=256):
    ks = jax.random.split(key, 14)

    def rn(k, shape, scale=0.1):
        return jax.random.normal(k, shape, jnp.float32) * scale

    return {
        # conv1 / conv2 weights in (tap, in, out) layout; biases (1, out)
        "w1": rn(ks[0], (3, dim, dim)), "b1": rn(ks[1], (1, dim)),
        "w2": rn(ks[2], (3, dim, dim)), "b2": rn(ks[3], (1, dim)),
        # cross attention 1x1-conv projections in (in, out) layout
        "wq": rn(ks[4], (dim, embed_dim)), "bq": rn(ks[5], (1, embed_dim)),
        "wc": rn(ks[6], (cond_dim, embed_dim)), "bc": rn(ks[7], (1, embed_dim)),
        "wk": rn(ks[8], (embed_dim, embed_dim)), "bk": rn(ks[9], (1, embed_dim)),
        "wv": rn(ks[10], (embed_dim, embed_dim)), "bv": rn(ks[11], (1, embed_dim)),
        "wo": rn(ks[12], (embed_dim, dim)), "bo": rn(ks[13], (1, dim)),
        # BatchNorm1d affine params (PyTorch default init: weight=1, bias=0)
        "gamma": jnp.ones((1, dim), jnp.float32),
        "beta": jnp.zeros((1, dim), jnp.float32),
    }


# ---------------------------------------------------------------------------
# Pure-JAX f32 reference (mirrors the PyTorch module, training-mode BatchNorm).
# ---------------------------------------------------------------------------
def reference_forward(x_ncl, cond_ncl, params, embed_dim):
    def conv1d_k3(z, w, b):                      # z: (B, L, Cin), w: (3, Cin, Cout)
        zp = jnp.pad(z, ((0, 0), (1, 1), (0, 0)))
        return zp[:, :-2] @ w[0] + zp[:, 1:-1] @ w[1] + zp[:, 2:] @ w[2] + b

    xt = jnp.transpose(x_ncl, (0, 2, 1))
    ct = jnp.transpose(cond_ncl, (0, 2, 1))
    h = jax.nn.relu(conv1d_k3(xt, params["w1"], params["b1"]))
    h = conv1d_k3(h, params["w2"], params["b2"])
    q = h @ params["wq"] + params["bq"]
    cpj = ct @ params["wc"] + params["bc"]
    k = cpj @ params["wk"] + params["bk"]
    v = cpj @ params["wv"] + params["bv"]
    scores = jnp.einsum('bld,bmd->blm', q, k) / float(embed_dim) ** 0.5
    attn = jax.nn.softmax(scores, axis=-1)
    ctx = jnp.einsum('blm,bmd->bld', attn, v)
    ao = ctx @ params["wo"] + params["bo"]
    pre = ao + h + xt
    mean = pre.mean(axis=(0, 1), keepdims=True)
    var = ((pre - mean) ** 2).mean(axis=(0, 1), keepdims=True)
    y = (pre - mean) * jax.lax.rsqrt(var + EPS) * params["gamma"] + params["beta"]
    return jnp.transpose(y, (0, 2, 1))


if __name__ == "__main__":
    B, dim, cond_dim, L, Lc, embed_dim = 2, 8, 4, 16, 16, 256

    key = jax.random.PRNGKey(0)
    kx, kc, kp = jax.random.split(key, 3)
    x = jax.random.normal(kx, (B, dim, L), jnp.float32)          # NCL like torch
    cond = jax.random.normal(kc, (B, cond_dim, Lc), jnp.float32)

    params = make_params(kp, dim, cond_dim, embed_dim=embed_dim)
    prepared = prepare_params(params, dim, cond_dim, embed_dim)

    out = residual_block_forward(x, cond, prepared)
    out = jax.block_until_ready(out)

    assert out.shape == (B, dim, L) and out.dtype == jnp.float32
    assert bool(jnp.isfinite(out).all())

    ref = reference_forward(x, cond, params, embed_dim)
    max_err = float(jnp.max(jnp.abs(out - ref)))
    assert max_err < 5e-2, f"max abs err vs f32 reference: {max_err}"
    print("KERNEL_OK")
</pallas_src>

<mosaic_0001>
module attributes {stable_mosaic.version = 11 : i64} {
  func.func @_fused_residual_block_kernel(%arg0: i32, %arg1: memref<2x16x128xf32, #tpu.memory_space<vmem>>, %arg2: memref<2x16x128xf32, #tpu.memory_space<vmem>>, %arg3: memref<384x128xbf16, #tpu.memory_space<vmem>>, %arg4: memref<1x128xf32, #tpu.memory_space<vmem>>, %arg5: memref<384x128xbf16, #tpu.memory_space<vmem>>, %arg6: memref<1x128xf32, #tpu.memory_space<vmem>>, %arg7: memref<128x256xbf16, #tpu.memory_space<vmem>>, %arg8: memref<1x256xf32, #tpu.memory_space<vmem>>, %arg9: memref<128x256xbf16, #tpu.memory_space<vmem>>, %arg10: memref<1x256xf32, #tpu.memory_space<vmem>>, %arg11: memref<256x256xbf16, #tpu.memory_space<vmem>>, %arg12: memref<1x256xf32, #tpu.memory_space<vmem>>, %arg13: memref<256x256xbf16, #tpu.memory_space<vmem>>, %arg14: memref<1x256xf32, #tpu.memory_space<vmem>>, %arg15: memref<256x128xbf16, #tpu.memory_space<vmem>>, %arg16: memref<1x128xf32, #tpu.memory_space<vmem>>, %arg17: memref<2x16x128xf32, #tpu.memory_space<vmem>>, %arg18: memref<1x2x128xf32, #tpu.memory_space<vmem>>) attributes {dimension_semantics = [#tpu.dimension_semantics<parallel>], iteration_bounds = array<i64: 1>, scalar_prefetch = 0 : i64, scratch_operands = 0 : i64, tpu.core_type = #tpu.core_type<tc>, window_params = [{transform_indices = @transform_0, window_bounds = array<i64: 2, 16, 128>}, {transform_indices = @transform_1, window_bounds = array<i64: 2, 16, 128>}, {pipeline_mode = #tpu.pipeline_mode<synchronous>, transform_indices = @transform_2, window_bounds = array<i64: 384, 128>}, {pipeline_mode = #tpu.pipeline_mode<synchronous>, transform_indices = @transform_3, window_bounds = array<i64: 1, 128>}, {pipeline_mode = #tpu.pipeline_mode<synchronous>, transform_indices = @transform_4, window_bounds = array<i64: 384, 128>}, {pipeline_mode = #tpu.pipeline_mode<synchronous>, transform_indices = @transform_5, window_bounds = array<i64: 1, 128>}, {pipeline_mode = #tpu.pipeline_mode<synchronous>, transform_indices = @transform_6, window_bounds = array<i64: 128, 256>}, {pipeline_mode = #tpu.pipeline_mode<synchronous>, transform_indices = @transform_7, window_bounds = array<i64: 1, 256>}, {pipeline_mode = #tpu.pipeline_mode<synchronous>, transform_indices = @transform_8, window_bounds = array<i64: 128, 256>}, {pipeline_mode = #tpu.pipeline_mode<synchronous>, transform_indices = @transform_9, window_bounds = array<i64: 1, 256>}, {pipeline_mode = #tpu.pipeline_mode<synchronous>, transform_indices = @transform_10, window_bounds = array<i64: 256, 256>}, {pipeline_mode = #tpu.pipeline_mode<synchronous>, transform_indices = @transform_11, window_bounds = array<i64: 1, 256>}, {pipeline_mode = #tpu.pipeline_mode<synchronous>, transform_indices = @transform_12, window_bounds = array<i64: 256, 256>}, {pipeline_mode = #tpu.pipeline_mode<synchronous>, transform_indices = @transform_13, window_bounds = array<i64: 1, 256>}, {pipeline_mode = #tpu.pipeline_mode<synchronous>, transform_indices = @transform_14, window_bounds = array<i64: 256, 128>}, {pipeline_mode = #tpu.pipeline_mode<synchronous>, transform_indices = @transform_15, window_bounds = array<i64: 1, 128>}, {transform_indices = @transform_16, window_bounds = array<i64: 2, 16, 128>}, {transform_indices = @transform_17, window_bounds = array<i64: 1, 2, 128>}]} {
    %c0 = arith.constant 0 : index
    %c0_0 = arith.constant 0 : index
    %c0_1 = arith.constant 0 : index
    %0 = vector.load %arg1[%c0, %c0_0, %c0_1] : memref<2x16x128xf32, #tpu.memory_space<vmem>>, vector<2x16x128xf32>
    %c0_2 = arith.constant 0 : index
    %c0_3 = arith.constant 0 : index
    %c0_4 = arith.constant 0 : index
    %1 = vector.load %arg2[%c0_2, %c0_3, %c0_4] : memref<2x16x128xf32, #tpu.memory_space<vmem>>, vector<2x16x128xf32>
    %2 = arith.truncf %0 : vector<2x16x128xf32> to vector<2x16x128xbf16>
    %cst = arith.constant 0.000000e+00 : bf16
    %3 = vector.broadcast %cst : bf16 to vector<2x1x128xbf16>
    %4 = vector.extract_strided_slice %2 {offsets = [0, 0, 0], sizes = [2, 15, 128], strides = [1, 1, 1]} : vector<2x16x128xbf16> to vector<2x15x128xbf16>
    %5 = tpu.concatenate %3, %4 in 1 : vector<2x1x128xbf16>, vector<2x15x128xbf16> -> vector<2x16x128xbf16>
    %6 = vector.extract_strided_slice %2 {offsets = [0, 1, 0], sizes = [2, 15, 128], strides = [1, 1, 1]} : vector<2x16x128xbf16> to vector<2x15x128xbf16>
    %7 = tpu.concatenate %6, %3 in 1 : vector<2x15x128xbf16>, vector<2x1x128xbf16> -> vector<2x16x128xbf16>
    %8 = tpu.concatenate %5, %2, %7 in 2 : vector<2x16x128xbf16>, vector<2x16x128xbf16>, vector<2x16x128xbf16> -> vector<2x16x384xbf16>
    %9 = vector.shape_cast %8 : vector<2x16x384xbf16> to vector<32x384xbf16>
    %c0_5 = arith.constant 0 : index
    %c0_6 = arith.constant 0 : index
    %10 = vector.load %arg3[%c0_5, %c0_6] : memref<384x128xbf16, #tpu.memory_space<vmem>>, vector<384x128xbf16>
    %cst_7 = arith.constant dense<0.000000e+00> : vector<32x128xf32>
    %11 = tpu.matmul %9, %10, %cst_7 {dimension_numbers = #tpu.dot_dimension_numbers<[1], [0], [0], [1], [0, 0, 1, 1], [], []>} : vector<32x384xbf16>, vector<384x128xbf16>, vector<32x128xf32> -> vector<32x128xf32>
    %c0_8 = arith.constant 0 : index
    %c0_9 = arith.constant 0 : index
    %12 = vector.load %arg4[%c0_8, %c0_9] : memref<1x128xf32, #tpu.memory_space<vmem>>, vector<1x128xf32>
    %13 = vector.broadcast %12 : vector<1x128xf32> to vector<32x128xf32>
    %14 = arith.addf %11, %13 : vector<32x128xf32>
    %cst_10 = arith.constant 0.000000e+00 : f32
    %15 = vector.broadcast %cst_10 : f32 to vector<32x128xf32>
    %16 = arith.maximumf %14, %15 : vector<32x128xf32>
    %17 = vector.shape_cast %16 : vector<32x128xf32> to vector<2x16x128xf32>
    %18 = arith.truncf %17 : vector<2x16x128xf32> to vector<2x16x128xbf16>
    %cst_11 = arith.constant 0.000000e+00 : bf16
    %19 = vector.broadcast %cst_11 : bf16 to vector<2x1x128xbf16>
    %20 = vector.extract_strided_slice %18 {offsets = [0, 0, 0], sizes = [2, 15, 128], strides = [1, 1, 1]} : vector<2x16x128xbf16> to vector<2x15x128xbf16>
    %21 = tpu.concatenate %19, %20 in 1 : vector<2x1x128xbf16>, vector<2x15x128xbf16> -> vector<2x16x128xbf16>
    %22 = vector.extract_strided_slice %18 {offsets = [0, 1, 0], sizes = [2, 15, 128], strides = [1, 1, 1]} : vector<2x16x128xbf16> to vector<2x15x128xbf16>
    %23 = tpu.concatenate %22, %19 in 1 : vector<2x15x128xbf16>, vector<2x1x128xbf16> -> vector<2x16x128xbf16>
    %24 = tpu.concatenate %21, %18, %23 in 2 : vector<2x16x128xbf16>, vector<2x16x128xbf16>, vector<2x16x128xbf16> -> vector<2x16x384xbf16>
    %25 = vector.shape_cast %24 : vector<2x16x384xbf16> to vector<32x384xbf16>
    %c0_12 = arith.constant 0 : index
    %c0_13 = arith.constant 0 : index
    %26 = vector.load %arg5[%c0_12, %c0_13] : memref<384x128xbf16, #tpu.memory_space<vmem>>, vector<384x128xbf16>
    %cst_14 = arith.constant dense<0.000000e+00> : vector<32x128xf32>
    %27 = tpu.matmul %25, %26, %cst_14 {dimension_numbers = #tpu.dot_dimension_numbers<[1], [0], [0], [1], [0, 0, 1, 1], [], []>} : vector<32x384xbf16>, vector<384x128xbf16>, vector<32x128xf32> -> vector<32x128xf32>
    %c0_15 = arith.constant 0 : index
    %c0_16 = arith.constant 0 : index
    %28 = vector.load %arg6[%c0_15, %c0_16] : memref<1x128xf32, #tpu.memory_space<vmem>>, vector<1x128xf32>
    %29 = vector.broadcast %28 : vector<1x128xf32> to vector<32x128xf32>
    %30 = arith.addf %27, %29 : vector<32x128xf32>
    %31 = arith.truncf %30 : vector<32x128xf32> to vector<32x128xbf16>
    %c0_17 = arith.constant 0 : index
    %c0_18 = arith.constant 0 : index
    %32 = vector.load %arg7[%c0_17, %c0_18] : memref<128x256xbf16, #tpu.memory_space<vmem>>, vector<128x256xbf16>
    %cst_19 = arith.constant dense<0.000000e+00> : vector<32x256xf32>
    %33 = tpu.matmul %31, %32, %cst_19 {dimension_numbers = #tpu.dot_dimension_numbers<[1], [0], [0], [1], [0, 0, 1, 1], [], []>} : vector<32x128xbf16>, vector<128x256xbf16>, vector<32x256xf32> -> vector<32x256xf32>
    %c0_20 = arith.constant 0 : index
    %c0_21 = arith.constant 0 : index
    %34 = vector.load %arg8[%c0_20, %c0_21] : memref<1x256xf32, #tpu.memory_space<vmem>>, vector<1x256xf32>
    %35 = vector.broadcast %34 : vector<1x256xf32> to vector<32x256xf32>
    %36 = arith.addf %33, %35 : vector<32x256xf32>
    %37 = vector.shape_cast %1 : vector<2x16x128xf32> to vector<32x128xf32>
    %38 = arith.truncf %37 : vector<32x128xf32> to vector<32x128xbf16>
    %c0_22 = arith.constant 0 : index
    %c0_23 = arith.constant 0 : index
    %39 = vector.load %arg9[%c0_22, %c0_23] : memref<128x256xbf16, #tpu.memory_space<vmem>>, vector<128x256xbf16>
    %cst_24 = arith.constant dense<0.000000e+00> : vector<32x256xf32>
    %40 = tpu.matmul %38, %39, %cst_24 {dimension_numbers = #tpu.dot_dimension_numbers<[1], [0], [0], [1], [0, 0, 1, 1], [], []>} : vector<32x128xbf16>, vector<128x256xbf16>, vector<32x256xf32> -> vector<32x256xf32>
    %c0_25 = arith.constant 0 : index
    %c0_26 = arith.constant 0 : index
    %41 = vector.load %arg10[%c0_25, %c0_26] : memref<1x256xf32, #tpu.memory_space<vmem>>, vector<1x256xf32>
    %42 = vector.broadcast %41 : vector<1x256xf32> to vector<32x256xf32>
    %43 = arith.addf %40, %42 : vector<32x256xf32>
    %44 = arith.truncf %43 : vector<32x256xf32> to vector<32x256xbf16>
    %c0_27 = arith.constant 0 : index
    %c0_28 = arith.constant 0 : index
    %45 = vector.load %arg11[%c0_27, %c0_28] : memref<256x256xbf16, #tpu.memory_space<vmem>>, vector<256x256xbf16>
    %cst_29 = arith.constant dense<0.000000e+00> : vector<32x256xf32>
    %46 = tpu.matmul %44, %45, %cst_29 {dimension_numbers = #tpu.dot_dimension_numbers<[1], [0], [0], [1], [0, 0, 1, 1], [], []>} : vector<32x256xbf16>, vector<256x256xbf16>, vector<32x256xf32> -> vector<32x256xf32>
    %c0_30 = arith.constant 0 : index
    %c0_31 = arith.constant 0 : index
    %47 = vector.load %arg12[%c0_30, %c0_31] : memref<1x256xf32, #tpu.memory_space<vmem>>, vector<1x256xf32>
    %48 = vector.broadcast %47 : vector<1x256xf32> to vector<32x256xf32>
    %49 = arith.addf %46, %48 : vector<32x256xf32>
    %c0_32 = arith.constant 0 : index
    %c0_33 = arith.constant 0 : index
    %50 = vector.load %arg13[%c0_32, %c0_33] : memref<256x256xbf16, #tpu.memory_space<vmem>>, vector<256x256xbf16>
    %cst_34 = arith.constant dense<0.000000e+00> : vector<32x256xf32>
    %51 = tpu.matmul %44, %50, %cst_34 {dimension_numbers = #tpu.dot_dimension_numbers<[1], [0], [0], [1], [0, 0, 1, 1], [], []>} : vector<32x256xbf16>, vector<256x256xbf16>, vector<32x256xf32> -> vector<32x256xf32>
    %c0_35 = arith.constant 0 : index
    %c0_36 = arith.constant 0 : index
    %52 = vector.load %arg14[%c0_35, %c0_36] : memref<1x256xf32, #tpu.memory_space<vmem>>, vector<1x256xf32>
    %53 = vector.broadcast %52 : vector<1x256xf32> to vector<32x256xf32>
    %54 = arith.addf %51, %53 : vector<32x256xf32>
    %55 = arith.truncf %36 : vector<32x256xf32> to vector<32x256xbf16>
    %56 = vector.shape_cast %55 : vector<32x256xbf16> to vector<2x16x256xbf16>
    %57 = arith.truncf %49 : vector<32x256xf32> to vector<32x256xbf16>
    %58 = vector.shape_cast %57 : vector<32x256xbf16> to vector<2x16x256xbf16>
    %59 = arith.truncf %54 : vector<32x256xf32> to vector<32x256xbf16>
    %60 = vector.shape_cast %59 : vector<32x256xbf16> to vector<2x16x256xbf16>
    "tpu.trace_start"() <{level = 10 : i32, message = "bqd,bkd->bqk"}> : () -> ()
    %cst_37 = arith.constant dense<0.000000e+00> : vector<2x16x16xf32>
    %61 = tpu.matmul %56, %58, %cst_37 {dimension_numbers = #tpu.dot_dimension_numbers<[2], [2], [1], [1], [0, 0, 0, 1, 1, 1], [0], [0]>} : vector<2x16x256xbf16>, vector<2x16x256xbf16>, vector<2x16x16xf32> -> vector<2x16x16xf32>
    "tpu.trace_stop"() : () -> ()
    %cst_38 = arith.constant 6.250000e-02 : f32
    %62 = vector.broadcast %cst_38 : f32 to vector<2x16x16xf32>
    %63 = arith.mulf %61, %62 : vector<2x16x16xf32>
    %cst_39 = arith.constant dense<0xFF800000> : vector<2x16xf32>
    %64 = vector.multi_reduction <maximumf>, %63, %cst_39 [2] : vector<2x16x16xf32> to vector<2x16xf32>
    %65 = vector.shape_cast %64 : vector<2x16xf32> to vector<2x16x1xf32>
    %66 = vector.broadcast %65 : vector<2x16x1xf32> to vector<2x16x16xf32>
    %67 = arith.subf %63, %66 : vector<2x16x16xf32>
    %68 = math.exp %67 : vector<2x16x16xf32>
    %cst_40 = arith.constant dense<0.000000e+00> : vector<2x16xf32>
    %69 = vector.multi_reduction <add>, %68, %cst_40 [2] : vector<2x16x16xf32> to vector<2x16xf32>
    %70 = vector.shape_cast %69 : vector<2x16xf32> to vector<2x16x1xf32>
    %71 = tpu.reciprocal %70 : vector<2x16x1xf32> -> vector<2x16x1xf32>
    %72 = vector.broadcast %71 : vector<2x16x1xf32> to vector<2x16x16xf32>
    %73 = arith.mulf %68, %72 : vector<2x16x16xf32>
    %74 = arith.truncf %73 : vector<2x16x16xf32> to vector<2x16x16xbf16>
    "tpu.trace_start"() <{level = 10 : i32, message = "bqk,bkd->bqd"}> : () -> ()
    %cst_41 = arith.constant dense<0.000000e+00> : vector<2x16x256xf32>
    %75 = tpu.matmul %74, %60, %cst_41 {dimension_numbers = #tpu.dot_dimension_numbers<[2], [1], [1], [2], [0, 0, 0, 1, 1, 2], [0], [0]>} : vector<2x16x16xbf16>, vector<2x16x256xbf16>, vector<2x16x256xf32> -> vector<2x16x256xf32>
    "tpu.trace_stop"() : () -> ()
    %76 = vector.shape_cast %75 : vector<2x16x256xf32> to vector<32x256xf32>
    %77 = arith.truncf %76 : vector<32x256xf32> to vector<32x256xbf16>
    %c0_42 = arith.constant 0 : index
    %c0_43 = arith.constant 0 : index
    %78 = vector.load %arg15[%c0_42, %c0_43] : memref<256x128xbf16, #tpu.memory_space<vmem>>, vector<256x128xbf16>
    %cst_44 = arith.constant dense<0.000000e+00> : vector<32x128xf32>
    %79 = tpu.matmul %77, %78, %cst_44 {dimension_numbers = #tpu.dot_dimension_numbers<[1], [0], [0], [1], [0, 0, 1, 1], [], []>} : vector<32x256xbf16>, vector<256x128xbf16>, vector<32x128xf32> -> vector<32x128xf32>
    %c0_45 = arith.constant 0 : index
    %c0_46 = arith.constant 0 : index
    %80 = vector.load %arg16[%c0_45, %c0_46] : memref<1x128xf32, #tpu.memory_space<vmem>>, vector<1x128xf32>
    %81 = vector.broadcast %80 : vector<1x128xf32> to vector<32x128xf32>
    %82 = arith.addf %79, %81 : vector<32x128xf32>
    %83 = arith.addf %82, %30 : vector<32x128xf32>
    %84 = vector.shape_cast %83 : vector<32x128xf32> to vector<2x16x128xf32>
    %85 = arith.addf %84, %0 : vector<2x16x128xf32>
    %c0_47 = arith.constant 0 : index
    %c0_48 = arith.constant 0 : index
    %c0_49 = arith.constant 0 : index
    %86 = vector.load %arg17[%c0_47, %c0_48, %c0_49] : memref<2x16x128xf32, #tpu.memory_space<vmem>>, vector<2x16x128xf32>
    tpu.vector_store %arg17[%c0_47, %c0_48, %c0_49], %85 {strides = array<i32>} : memref<2x16x128xf32, #tpu.memory_space<vmem>>, vector<2x16x128xf32>,
    %87 = vector.shape_cast %85 : vector<2x16x128xf32> to vector<32x128xf32>
    %cst_50 = arith.constant dense<0.000000e+00> : vector<128xf32>
    %88 = vector.multi_reduction <add>, %87, %cst_50 [0] : vector<32x128xf32> to vector<128xf32>
    %89 = vector.shape_cast %88 : vector<128xf32> to vector<1x128xf32>
    %90 = arith.mulf %87, %87 : vector<32x128xf32>
    %cst_51 = arith.constant dense<0.000000e+00> : vector<128xf32>
    %91 = vector.multi_reduction <add>, %90, %cst_51 [0] : vector<32x128xf32> to vector<128xf32>
    %92 = vector.shape_cast %91 : vector<128xf32> to vector<1x128xf32>
    %93 = tpu.concatenate %89, %92 in 0 : vector<1x128xf32>, vector<1x128xf32> -> vector<2x128xf32>
    %94 = vector.shape_cast %93 : vector<2x128xf32> to vector<1x2x128xf32>
    %c0_52 = arith.constant 0 : index
    %c0_53 = arith.constant 0 : index
    %c0_54 = arith.constant 0 : index
    %95 = vector.load %arg18[%c0_52, %c0_53, %c0_54] : memref<1x2x128xf32, #tpu.memory_space<vmem>>, vector<1x2x128xf32>
    tpu.vector_store %arg18[%c0_52, %c0_53, %c0_54], %94 {strides = array<i32>} : memref<1x2x128xf32, #tpu.memory_space<vmem>>, vector<1x2x128xf32>,
    return
  }
  func.func @transform_0(%arg0: i32) -> (i32, i32, i32) {
    %c0_i32 = arith.constant 0 : i32
    %c0_i32_0 = arith.constant 0 : i32
    %c0_i32_1 = arith.constant 0 : i32
    return %arg0, %c0_i32, %c0_i32_0 : i32, i32, i32
  }
  func.func @transform_1(%arg0: i32) -> (i32, i32, i32) {
    %c0_i32 = arith.constant 0 : i32
    %c0_i32_0 = arith.constant 0 : i32
    %c0_i32_1 = arith.constant 0 : i32
    return %arg0, %c0_i32, %c0_i32_0 : i32, i32, i32
  }
  func.func @transform_2(%arg0: i32) -> (i32, i32) {
    %c0_i32 = arith.constant 0 : i32
    %c0_i32_0 = arith.constant 0 : i32
    %c0_i32_1 = arith.constant 0 : i32
    return %c0_i32, %c0_i32_0 : i32, i32
  }
  func.func @transform_3(%arg0: i32) -> (i32, i32) {
    %c0_i32 = arith.constant 0 : i32
    %c0_i32_0 = arith.constant 0 : i32
    %c0_i32_1 = arith.constant 0 : i32
    return %c0_i32, %c0_i32_0 : i32, i32
  }
  func.func @transform_4(%arg0: i32) -> (i32, i32) {
    %c0_i32 = arith.constant 0 : i32
    %c0_i32_0 = arith.constant 0 : i32
    %c0_i32_1 = arith.constant 0 : i32
    return %c0_i32, %c0_i32_0 : i32, i32
  }
  func.func @transform_5(%arg0: i32) -> (i32, i32) {
    %c0_i32 = arith.constant 0 : i32
    %c0_i32_0 = arith.constant 0 : i32
    %c0_i32_1 = arith.constant 0 : i32
    return %c0_i32, %c0_i32_0 : i32, i32
  }
  func.func @transform_6(%arg0: i32) -> (i32, i32) {
    %c0_i32 = arith.constant 0 : i32
    %c0_i32_0 = arith.constant 0 : i32
    %c0_i32_1 = arith.constant 0 : i32
    return %c0_i32, %c0_i32_0 : i32, i32
  }
  func.func @transform_7(%arg0: i32) -> (i32, i32) {
    %c0_i32 = arith.constant 0 : i32
    %c0_i32_0 = arith.constant 0 : i32
    %c0_i32_1 = arith.constant 0 : i32
    return %c0_i32, %c0_i32_0 : i32, i32
  }
  func.func @transform_8(%arg0: i32) -> (i32, i32) {
    %c0_i32 = arith.constant 0 : i32
    %c0_i32_0 = arith.constant 0 : i32
    %c0_i32_1 = arith.constant 0 : i32
    return %c0_i32, %c0_i32_0 : i32, i32
  }
  func.func @transform_9(%arg0: i32) -> (i32, i32) {
    %c0_i32 = arith.constant 0 : i32
    %c0_i32_0 = arith.constant 0 : i32
    %c0_i32_1 = arith.constant 0 : i32
    return %c0_i32, %c0_i32_0 : i32, i32
  }
  func.func @transform_10(%arg0: i32) -> (i32, i32) {
    %c0_i32 = arith.constant 0 : i32
    %c0_i32_0 = arith.constant 0 : i32
    %c0_i32_1 = arith.constant 0 : i32
    return %c0_i32, %c0_i32_0 : i32, i32
  }
  func.func @transform_11(%arg0: i32) -> (i32, i32) {
    %c0_i32 = arith.constant 0 : i32
    %c0_i32_0 = arith.constant 0 : i32
    %c0_i32_1 = arith.constant 0 : i32
    return %c0_i32, %c0_i32_0 : i32, i32
  }
  func.func @transform_12(%arg0: i32) -> (i32, i32) {
    %c0_i32 = arith.constant 0 : i32
    %c0_i32_0 = arith.constant 0 : i32
    %c0_i32_1 = arith.constant 0 : i32
    return %c0_i32, %c0_i32_0 : i32, i32
  }
  func.func @transform_13(%arg0: i32) -> (i32, i32) {
    %c0_i32 = arith.constant 0 : i32
    %c0_i32_0 = arith.constant 0 : i32
    %c0_i32_1 = arith.constant 0 : i32
    return %c0_i32, %c0_i32_0 : i32, i32
  }
  func.func @transform_14(%arg0: i32) -> (i32, i32) {
    %c0_i32 = arith.constant 0 : i32
    %c0_i32_0 = arith.constant 0 : i32
    %c0_i32_1 = arith.constant 0 : i32
    return %c0_i32, %c0_i32_0 : i32, i32
  }
  func.func @transform_15(%arg0: i32) -> (i32, i32) {
    %c0_i32 = arith.constant 0 : i32
    %c0_i32_0 = arith.constant 0 : i32
    %c0_i32_1 = arith.constant 0 : i32
    return %c0_i32, %c0_i32_0 : i32, i32
  }
  func.func @transform_16(%arg0: i32) -> (i32, i32, i32) {
    %c0_i32 = arith.constant 0 : i32
    %c0_i32_0 = arith.constant 0 : i32
    %c0_i32_1 = arith.constant 0 : i32
    return %arg0, %c0_i32, %c0_i32_0 : i32, i32, i32
  }
  func.func @transform_17(%arg0: i32) -> (i32, i32, i32) {
    %c0_i32 = arith.constant 0 : i32
    %c0_i32_0 = arith.constant 0 : i32
    %c0_i32_1 = arith.constant 0 : i32
    return %arg0, %c0_i32, %c0_i32_0 : i32, i32, i32
  }
}

</mosaic_0001>

<bundles_post_ra>
// kernel: tpu_custom_call.1
= control target key start
LH: loop header
LB: loop body
LE: loop exit
PB: predicated region body
PF: predicated region fallthrough
CT: control target
= control target key end

     0   :  { %s3367_s0 = inlined_call_operand.hbm [shape: f32[2,16,128], index: 0, kind: input, shape index: {}]   ;;  %s3368_s1 = inlined_call_operand.hbm [shape: f32[2,16,128], index: 1, kind: input, shape index: {}]   ;;  %s3369_s2 = inlined_call_operand.hbm [shape: bf16[384,128], index: 2, kind: input, shape index: {}]   ;;  %s3370_s3 = inlined_call_operand.vmem [shape: f32[1,128], index: 3, kind: input, shape index: {}]   ;;  %s3371_s4 = inlined_call_operand.hbm [shape: bf16[384,128], index: 4, kind: input, shape index: {}]   ;;  %s3372_s5 = inlined_call_operand.vmem [shape: f32[1,128], index: 5, kind: input, shape index: {}]   ;;  %s3373_s6 = inlined_call_operand.hbm [shape: bf16[128,256], index: 6, kind: input, shape index: {}]   ;;  %s3374_s7 = inlined_call_operand.vmem [shape: f32[1,256], index: 7, kind: input, shape index: {}]   ;;  %s3375_s8 = inlined_call_operand.hbm [shape: bf16[128,256], index: 8, kind: input, shape index: {}]   ;;  %s3376_s9 = inlined_call_operand.vmem [shape: f32[1,256], index: 9, kind: input, shape index: {}]   ;;  %s3377_s10 = inlined_call_operand.hbm [shape: bf16[256,256], index: 10, kind: input, shape index: {}]   ;;  %s3378_s11 = inlined_call_operand.vmem [shape: f32[1,256], index: 11, kind: input, shape index: {}]   ;;  %s3379_s12 = inlined_call_operand.hbm [shape: bf16[256,256], index: 12, kind: input, shape index: {}]   ;;  %s3380_s13 = inlined_call_operand.vmem [shape: f32[1,256], index: 13, kind: input, shape index: {}]   ;;  %s3381_s14 = inlined_call_operand.hbm [shape: bf16[256,128], index: 14, kind: input, shape index: {}]   ;;  %s3382_s15 = inlined_call_operand.vmem [shape: f32[1,128], index: 15, kind: input, shape index: {}]   ;;  %s3383_s16 = inlined_call_operand.hbm [shape: f32[2,16,128], index: 16, kind: output, shape index: {0}]   ;;  %s3384_s17 = inlined_call_operand.hbm [shape: f32[1,2,128], index: 17, kind: output, shape index: {1}]  }
   0x1   :  { %3389 = sst [smem:[#allocation27_spill]] %s3367_s0 }
   0x2   :  { %3390 = sst [smem:[#allocation28_spill]] %s3368_s1 }
   0x3   :  { %3391 = sst [smem:[#allocation29_spill]] %s3383_s16 }
   0x4   :  { %3392 = sst [smem:[#allocation30_spill]] %s3384_s17 }
   0x5   :  { %23 = vsyncpa [#allocation3], 0 }
   0x6   :  { %24 = vsyncpa [#allocation6], 0 }
   0x7   :  { %25 = vsyncpa [#allocation9], 0 }
   0x8   :  { %26 = vsyncpa [#allocation12], 0 }
   0x9   :  { %27 = vsyncpa [#allocation15], 0 }
   0xa   :  { %28 = vsyncpa [#allocation4], 0 }
   0xb   :  { %29 = vsyncpa [#allocation19], 0  ;;  %s2998_s24 = smov [#allocation5]   ;;  %s3393_s28 = sld [smem:[#allocation28_spill]] }
   0xc   :  { %s47_s25 = sshll.u32 %s2998_s24, 4  ;;  %s48_s25 = int_to_ptr.vmem [resolvable:$true] %s47_s25 }
  0x11   :  { %s2742_s29 = scalar_lea.hbm %s3393_s28, 512 }
  0x12   :  { %p2743_p0 = scmp.ne.s32.totalorder %s3393_s28, %s2742_s29  ;;  %p2746_p1 = scmp.lt.u32.totalorder %s2742_s29, %s3393_s28 }
  0x14   :  { %p2748_p2 = pnand %p2746_p1, %p2743_p0 }
  0x16   :  { %2751 = shalt.err (!%p2748_p2)
}
  0x17   :  { %s2752_s1 = scalar_lea.vmem %s48_s25, 512  ;;  %p2757_p4 = scmp.lt.s32.totalorder %s48_s25, %s48_s25 }
  0x18   :  { %p2753_p3 = scmp.ne.s32.totalorder %s48_s25, %s2752_s1  ;;  %p2758_p5 = scmp.lt.s32.totalorder %s2752_s1, %s2752_s1 }
  0x1a   :  { %p2759_p6 = por %p2758_p5, %p2757_p4 }
  0x1c   :  { %p2760_p7 = pnand %p2759_p6, %p2753_p3 }
  0x1e   :  { %2763 = shalt.err (!%p2760_p7)
}
  0x1f   :  { %s2999_s20 = smov 128   ;;  %s3000_s21 = smov 8  }
  0x20   :  { %53 = dma.hbm_to_vmem [thread:$0]  %s3393_s28, 512, %s48_s25, [#allocation6], %s2999_s20, %s2999_s20, %s3000_s21  }
  0x21   :  { %s3001_s24 = smov [#allocation8]   ;;  %s3002_s27 = smov [#allocation11]  }
  0x22   :  { %s73_s26 = sshll.u32 %s3001_s24, 4  ;;  %s101_s29 = sshll.u32 %s3002_s27, 4  ;;  %s74_s26 = int_to_ptr.vmem [resolvable:$true] %s73_s26  ;;  %s102_s29 = int_to_ptr.vmem [resolvable:$true] %s101_s29 }
  0x23   :  { %s2764_s18 = scalar_lea.hbm %s3371_s4, 3072 }
  0x24   :  { %p2765_p8 = scmp.ne.s32.totalorder %s3371_s4, %s2764_s18  ;;  %p2768_p9 = scmp.lt.u32.totalorder %s2764_s18, %s3371_s4 }
  0x26   :  { %p2770_p10 = pnand %p2768_p9, %p2765_p8 }
  0x28   :  { %2773 = shalt.err (!%p2770_p10)
}
  0x29   :  { %s2774_s25 = scalar_lea.vmem %s74_s26, 3072  ;;  %p2779_p12 = scmp.lt.s32.totalorder %s74_s26, %s74_s26 }
  0x2a   :  { %p2775_p11 = scmp.ne.s32.totalorder %s74_s26, %s2774_s25  ;;  %p2780_p13 = scmp.lt.s32.totalorder %s2774_s25, %s2774_s25 }
  0x2c   :  { %p2781_p0 = por %p2780_p13, %p2779_p12 }
  0x2e   :  { %p2782_p1 = pnand %p2781_p0, %p2775_p11 }
  0x30   :  { %2785 = shalt.err (!%p2782_p1)
}
  0x31   :  { %s3003_s28 = smov 64   ;;  %s3004_s22 = smov 4  }
  0x32   :  { %79 = dma.hbm_to_vmem [thread:$0]  %s3371_s4, 3072, %s74_s26, [#allocation9], %s3003_s28, %s3003_s28, %s3004_s22  }
  0x33   :  { %s2786_s27 = scalar_lea.hbm %s3375_s8, 2048 }
  0x34   :  { %p2787_p2 = scmp.ne.s32.totalorder %s3375_s8, %s2786_s27  ;;  %p2790_p3 = scmp.lt.u32.totalorder %s2786_s27, %s3375_s8 }
  0x36   :  { %p2792_p4 = pnand %p2790_p3, %p2787_p2 }
  0x38   :  { %2795 = shalt.err (!%p2792_p4)
}
  0x39   :  { %s2796_s1 = scalar_lea.vmem %s102_s29, 2048  ;;  %p2801_p6 = scmp.lt.s32.totalorder %s102_s29, %s102_s29 }
  0x3a   :  { %p2797_p5 = scmp.ne.s32.totalorder %s102_s29, %s2796_s1  ;;  %p2802_p7 = scmp.lt.s32.totalorder %s2796_s1, %s2796_s1 }
  0x3c   :  { %p2803_p8 = por %p2802_p7, %p2801_p6 }
  0x3e   :  { %p2804_p9 = pnand %p2803_p8, %p2797_p5 }
  0x40   :  { %2807 = shalt.err (!%p2804_p9)
}
  0x41   :  { %107 = dma.hbm_to_vmem [thread:$0]  %s3375_s8, 2048, %s102_s29, [#allocation12], %s2999_s20, %s2999_s20, %s3000_s21  }
  0x42   :  { %s3005_s25 = smov [#allocation14]   ;;  %s3006_s24 = smov [#allocation2]  }
  0x43   :  { %s129_s23 = sshll.u32 %s3005_s25, 4  ;;  %s35_s16 = sshll.u32 %s3006_s24, 4  ;;  %s130_s23 = int_to_ptr.vmem [resolvable:$true] %s129_s23  ;;  %s36_s16 = int_to_ptr.vmem [resolvable:$true] %s35_s16 }
  0x44   :  { %s2808_s0 = scalar_lea.hbm %s3379_s12, 4096 }
  0x45   :  { %p2809_p10 = scmp.ne.s32.totalorder %s3379_s12, %s2808_s0  ;;  %p2812_p11 = scmp.lt.u32.totalorder %s2808_s0, %s3379_s12 }
  0x47   :  { %p2814_p12 = pnand %p2812_p11, %p2809_p10 }
  0x49   :  { %2817 = shalt.err (!%p2814_p12)
}
  0x4a   :  { %s2818_s8 = scalar_lea.vmem %s130_s23, 4096  ;;  %p2823_p0 = scmp.lt.s32.totalorder %s130_s23, %s130_s23 }
  0x4b   :  { %p2819_p13 = scmp.ne.s32.totalorder %s130_s23, %s2818_s8  ;;  %p2824_p1 = scmp.lt.s32.totalorder %s2818_s8, %s2818_s8 }
  0x4d   :  { %p2825_p2 = por %p2824_p1, %p2823_p0 }
  0x4f   :  { %p2826_p3 = pnand %p2825_p2, %p2819_p13 }
  0x51   :  { %2829 = shalt.err (!%p2826_p3)
}
  0x52   :  { %135 = dma.hbm_to_vmem [thread:$0]  %s3379_s12, 4096, %s130_s23, [#allocation15], %s2999_s20, %s2999_s20, %s3000_s21  }
  0x53   :  { %s3394_s24 = sld [smem:[#allocation27_spill]] }
  0x59   :  { %s2830_s17 = scalar_lea.hbm %s3394_s24, 512 }
  0x5a   :  { %p2831_p4 = scmp.ne.s32.totalorder %s3394_s24, %s2830_s17  ;;  %p2834_p5 = scmp.lt.u32.totalorder %s2830_s17, %s3394_s24 }
  0x5c   :  { %p2836_p6 = pnand %p2834_p5, %p2831_p4 }
  0x5e   :  { %2839 = shalt.err (!%p2836_p6)
}
  0x5f   :  { %s2840_s19 = scalar_lea.vmem %s36_s16, 512  ;;  %p2845_p8 = scmp.lt.s32.totalorder %s36_s16, %s36_s16 }
  0x60   :  { %p2841_p7 = scmp.ne.s32.totalorder %s36_s16, %s2840_s19  ;;  %p2846_p9 = scmp.lt.s32.totalorder %s2840_s19, %s2840_s19 }
  0x62   :  { %p2847_p10 = por %p2846_p9, %p2845_p8 }
  0x64   :  { %p2848_p11 = pnand %p2847_p10, %p2841_p7 }
  0x66   :  { %2851 = shalt.err (!%p2848_p11)
}
  0x67   :  { %41 = dma.hbm_to_vmem [thread:$0]  %s3394_s24, 512, %s36_s16, [#allocation3], %s2999_s20, %s2999_s20, %s3000_s21  }
  0x68   :  { %s3007_s1 = smov [#allocation7]   ;;  %s3008_s29 = smov [#allocation10]  }
  0x69   :  { %s59_s8 = sshll.u32 %s3007_s1, 4  ;;  %s87_s4 = sshll.u32 %s3008_s29, 4  ;;  %s60_s8 = int_to_ptr.vmem [resolvable:$true] %s59_s8  ;;  %s88_s4 = int_to_ptr.vmem [resolvable:$true] %s87_s4 }
  0x6a   :  { %s2852_s17 = scalar_lea.hbm %s3369_s2, 3072 }
  0x6b   :  { %p2853_p12 = scmp.ne.s32.totalorder %s3369_s2, %s2852_s17  ;;  %p2856_p13 = scmp.lt.u32.totalorder %s2852_s17, %s3369_s2 }
  0x6d   :  { %p2858_p0 = pnand %p2856_p13, %p2853_p12 }
  0x6f   :  { %2861 = shalt.err (!%p2858_p0)
}
  0x70   :  { %s2862_s16 = scalar_lea.vmem %s60_s8, 3072  ;;  %p2867_p2 = scmp.lt.s32.totalorder %s60_s8, %s60_s8 }
  0x71   :  { %p2863_p1 = scmp.ne.s32.totalorder %s60_s8, %s2862_s16  ;;  %p2868_p3 = scmp.lt.s32.totalorder %s2862_s16, %s2862_s16 }
  0x73   :  { %p2869_p4 = por %p2868_p3, %p2867_p2 }
  0x75   :  { %p2870_p5 = pnand %p2869_p4, %p2863_p1 }
  0x77   :  { %2873 = shalt.err (!%p2870_p5)
}
  0x78   :  { %65 = dma.hbm_to_vmem [thread:$0]  %s3369_s2, 3072, %s60_s8, [#allocation6], %s3003_s28, %s3003_s28, %s3004_s22  }
  0x79   :  { %s2874_s1 = scalar_lea.hbm %s3373_s6, 2048 }
  0x7a   :  { %p2875_p6 = scmp.ne.s32.totalorder %s3373_s6, %s2874_s1  ;;  %p2878_p7 = scmp.lt.u32.totalorder %s2874_s1, %s3373_s6 }
  0x7c   :  { %p2880_p8 = pnand %p2878_p7, %p2875_p6 }
  0x7e   :  { %2883 = shalt.err (!%p2880_p8)
}
  0x7f   :  { %s2884_s27 = scalar_lea.vmem %s88_s4, 2048  ;;  %p2889_p10 = scmp.lt.s32.totalorder %s88_s4, %s88_s4 }
  0x80   :  { %p2885_p9 = scmp.ne.s32.totalorder %s88_s4, %s2884_s27  ;;  %p2890_p11 = scmp.lt.s32.totalorder %s2884_s27, %s2884_s27 }
  0x82   :  { %p2891_p12 = por %p2890_p11, %p2889_p10 }
  0x84   :  { %p2892_p13 = pnand %p2891_p12, %p2885_p9 }
  0x86   :  { %2895 = shalt.err (!%p2892_p13)
}
  0x87   :  { %93 = dma.hbm_to_vmem [thread:$0]  %s3373_s6, 2048, %s88_s4, [#allocation9], %s2999_s20, %s2999_s20, %s3000_s21  }
  0x88   :  { %s3009_s0 = smov [#allocation13]   ;;  %s3010_s18 = smov [#allocation16]  }
  0x89   :  { %s115_s30 = sshll.u32 %s3009_s0, 4  ;;  %s143_s16 = sshll.u32 %s3010_s18, 4  ;;  %s116_s30 = int_to_ptr.vmem [resolvable:$true] %s115_s30  ;;  %s144_s16 = int_to_ptr.vmem [resolvable:$true] %s143_s16 }
  0x8a   :  { %s2896_s12 = scalar_lea.hbm %s3377_s10, 4096 }
  0x8b   :  { %p2897_p0 = scmp.ne.s32.totalorder %s3377_s10, %s2896_s12  ;;  %p2900_p1 = scmp.lt.u32.totalorder %s2896_s12, %s3377_s10 }
  0x8d   :  { %p2902_p2 = pnand %p2900_p1, %p2897_p0 }
  0x8f   :  { %2905 = shalt.err (!%p2902_p2)
}
  0x90   :  { %s2906_s6 = scalar_lea.vmem %s116_s30, 4096  ;;  %p2911_p4 = scmp.lt.s32.totalorder %s116_s30, %s116_s30 }
  0x91   :  { %p2907_p3 = scmp.ne.s32.totalorder %s116_s30, %s2906_s6  ;;  %p2912_p5 = scmp.lt.s32.totalorder %s2906_s6, %s2906_s6 }
  0x93   :  { %p2913_p6 = por %p2912_p5, %p2911_p4 }
  0x95   :  { %p2914_p7 = pnand %p2913_p6, %p2907_p3 }
  0x97   :  { %2917 = shalt.err (!%p2914_p7)
}
  0x98   :  { %121 = dma.hbm_to_vmem [thread:$0]  %s3377_s10, 4096, %s116_s30, [#allocation12], %s2999_s20, %s2999_s20, %s3000_s21  }
  0x99   :  { %s2918_s2 = scalar_lea.hbm %s3381_s14, 2048 }
  0x9a   :  { %p2919_p8 = scmp.ne.s32.totalorder %s3381_s14, %s2918_s2  ;;  %p2922_p9 = scmp.lt.u32.totalorder %s2918_s2, %s3381_s14 }
  0x9c   :  { %p2924_p10 = pnand %p2922_p9, %p2919_p8 }
  0x9e   :  { %2927 = shalt.err (!%p2924_p10)
}
  0x9f   :  { %s2928_s19 = scalar_lea.vmem %s144_s16, 2048  ;;  %p2933_p12 = scmp.lt.s32.totalorder %s144_s16, %s144_s16 }
  0xa0   :  { %p2929_p11 = scmp.ne.s32.totalorder %s144_s16, %s2928_s19  ;;  %p2934_p13 = scmp.lt.s32.totalorder %s2928_s19, %s2928_s19 }
  0xa2   :  { %p2935_p0 = por %p2934_p13, %p2933_p12 }
  0xa4   :  { %p2936_p1 = pnand %p2935_p0, %p2929_p11 }
  0xa6   :  { %2939 = shalt.err (!%p2936_p1)
}
  0xa7   :  { %149 = dma.hbm_to_vmem [thread:$0]  %s3381_s14, 2048, %s144_s16, [#allocation15], %s3003_s28, %s3003_s28, %s3004_s22  }
  0xa8   :  { %2984 = dma.done.wait [#allocation3], 512  }
  0xa9   :  { %2985 = vsyncadd [#allocation3], 4294966784 }
  0xaa   :  { %2986 = dma.done.wait [#allocation6], 3584  }
  0xab   :  { %2987 = vsyncadd [#allocation6], 4294963712 }
  0xac   :  { %2988 = dma.done.wait [#allocation9], 5120  }
  0xad   :  { %2989 = vsyncadd [#allocation9], 4294962176 }
  0xae   :  { %2990 = dma.done.wait [#allocation12], 6144  }
  0xaf   :  { %2991 = vsyncadd [#allocation12], 4294961152 }
  0xb0   :  { %2992 = dma.done.wait [#allocation15], 6144  }
  0xb1   :  { %2993 = vsyncadd [#allocation15], 4294961152  ;;  %v2514_v0 = vld [vmem:[#allocation7 + $0x40] sm:$0xff]   ;;  %v2516_v2 = vld [vmem:[#allocation7 + $0x48] sm:$0xff]   ;;  %vm206_vm0 = vcmask 1040384   ;;  %vm217_vm4 = vcmask 1047552  }
  0xb2   :  { %v2515_v1 = vld [vmem:[#allocation7] sm:$0xff]   ;;  %2354 = vmatprep.subr.bf16.mxu1 %v2514_v0  ;;  %v2517_v3 = vld [vmem:[#allocation7 + $0x8] sm:$0xff]   ;;  %v2518_v4 = vld [vmem:[#allocation7 + $0x50] sm:$0xff]   ;;  %vm207_vm1 = vsmask.f32 256  ;;  %vm1790_vm6 = vcmask 130048  }
  0xb3   :  { %2355 = vmatpush3.bf16.msra.mxu1 %v2515_v1  ;;  %v2519_v5 = vld [vmem:[#allocation7 + $0x10] sm:$0xff]   ;;  %v2520_v6 = vld [vmem:[#allocation7 + $0x58] sm:$0xff]   ;;  %v2522_v8 = vld [vmem:[#allocation7 + $0x60] sm:$0xff]   ;;  %vm218_vm3 = vsmask.f32 7424 }
  0xb4   :  { %2356 = vmatprep.subr.bf16.mxu1 %v2516_v2  ;;  %v2521_v7 = vld [vmem:[#allocation7 + $0x18] sm:$0xff]   ;;  %v2523_v9 = vld [vmem:[#allocation7 + $0x20] sm:$0xff]   ;;  %v2524_v10 = vld [vmem:[#allocation7 + $0x68] sm:$0xff]  }
  0xb5   :  { %v180_v11 = vld [vmem:[#allocation2] sm:$0xff]  ;;  %v181_v12 = vld [vmem:[#allocation2 + $0x8] sm:$0xff]  ;;  %v2526_v15 = vld [vmem:[#allocation7 + $0x70] sm:$0xff]  }
  0xb6   :  { %v188_v13 = vpack.c.bf16 %v181_v12, %v180_v11  ;;  %v2525_v14 = vld [vmem:[#allocation7 + $0x28] sm:$0xff]   ;;  %vm3240_vm2 = vmand %vm206_vm0, %vm207_vm1  ;;  %v182_v20 = vld [vmem:[#allocation2 + $0x10] sm:$0xff] }
  0xb7   :  { %2357 = vmatpush3.bf16.msra.mxu1 %v2517_v3  ;;  %v183_v21 = vld [vmem:[#allocation2 + $0x18] sm:$0xff]  ;;  %v2527_v22 = vld [vmem:[#allocation7 + $0x30] sm:$0xff]   ;;  %v2530_v30 = vld [vmem:[#allocation7 + $0x80] sm:$0xff]  }
  0xb8   :  { %2358 = vmatprep.subr.bf16.mxu1 %v2518_v4  ;;  %453 = vmatprep.mubr.bf16.mxu1 %v188_v13  ;;  %v191_v16 = vshrl.u32 %v188_v13, 16  ;;  %v194_v17 = vshll.u32 %v188_v13, 16  ;;  %v189_v24 = vpack.c.bf16 %v183_v21, %v182_v20  ;;  %v2528_v26 = vld [vmem:[#allocation7 + $0x78] sm:$0xff]   ;;  %vm3247_vm5 = vmand %vm217_vm4, %vm218_vm3  ;;  %v2531_v36 = vld [vmem:[#allocation7 + $0x88] sm:$0xff]  }
  0xb9   :  { %v2529_v27 = vld [vmem:[#allocation7 + $0x38] sm:$0xff]   ;;  %v2532_v39 = vld [vmem:[#allocation7 + $0x90] sm:$0xff]   ;;  %v2534_v41 = vld [vmem:[#allocation7 + $0xa0] sm:$0xff]  }
  0xba   :  { %v193_v18 = vrot.slane %v191_v16, 7  ;;  %v211_v25 = vrot.slane %v194_v17, 1  ;;  %v198_v28 = vshrl.u32 %v189_v24, 16  ;;  %v201_v29 = vshll.u32 %v189_v24, 16  ;;  %v2533_v40 = vld [vmem:[#allocation7 + $0x98] sm:$0xff]   ;;  %v2535_v42 = vld [vmem:[#allocation7 + $0xa8] sm:$0xff]  }
  0xbb   :  { %2359 = vmatpush3.bf16.msra.mxu1 %v2519_v5  ;;  %v2536_v43 = vld [vmem:[#allocation7 + $0xb0] sm:$0xff]   ;;  %v2537_v44 = vld [vmem:[#allocation7 + $0xb8] sm:$0xff]   ;;  %v2538_v48 = vld [vmem:[#allocation8 + $0x40] sm:$0xff]  }
  0xbc   :  { %2360 = vmatprep.subr.bf16.mxu1 %v2520_v6  ;;  %v196_v23 = vor.u32 %v194_v17, %v193_v18  ;;  %v200_v32 = vrot.slane %v198_v28, 7  ;;  %v212_v33 = vor.u32 %v211_v25, %v191_v16  ;;  %v213_v45 = vrot.slane %v201_v29, 1  ;;  %v2539_v49 = vld [vmem:[#allocation8] sm:$0xff]   ;;  %2392 = vmatprep.subr.bf16.mxu0 %v2538_v48  ;;  %v2541_v51 = vld [vmem:[#allocation8 + $0x48] sm:$0xff]   ;;  %v2544_v54 = vld [vmem:[#allocation8 + $0x50] sm:$0xff]  }
  0xbd   :  { %v2540_v50 = vld [vmem:[#allocation8 + $0x80] sm:$0xff]   ;;  %2393 = vmatpush3.bf16.msra.mxu0 %v2539_v49  ;;  %v2542_v52 = vld [vmem:[#allocation8 + $0x8] sm:$0xff]   ;;  %v2545_v55 = vld [vmem:[#allocation8 + $0x10] sm:$0xff]  }
  0xbe   :  { %v209_v31 = vsel %vm3240_vm2, 0, %v196_v23  ;;  %v203_v35 = vor.u32 %v201_v29, %v200_v32  ;;  %v220_v38 = vsel %vm3247_vm5, %v212_v33, 0  ;;  %v214_v46 = vor.u32 %v213_v45, %v198_v28  ;;  %2394 = vmatprep.subr.bf16.mxu0 %v2541_v51  ;;  %v2543_v53 = vld [vmem:[#allocation8 + $0x88] sm:$0xff]   ;;  %v2546_v56 = vld [vmem:[#allocation8 + $0x90] sm:$0xff]   ;;  %v2547_v57 = vld [vmem:[#allocation8 + $0x58] sm:$0xff]  }
  0xbf   :  { %2361 = vmatpush3.bf16.msra.mxu1 %v2521_v7  ;;  %v2549_v58 = vld [vmem:[#allocation8 + $0x98] sm:$0xff]   ;;  %v2550_v60 = vld [vmem:[#allocation8 + $0x60] sm:$0xff]   ;;  %v2553_v63 = vld [vmem:[#allocation8 + $0x68] sm:$0xff]  }
  0xc0   :  { %2362 = vmatprep.subr.bf16.mxu1 %v2522_v8  ;;  %v210_v37 = vsel %vm3240_vm2, 0, %v203_v35  ;;  %v221_v47 = vsel %vm3247_vm5, %v214_v46, 0  ;;  %v2548_v59 = vld [vmem:[#allocation8 + $0x18] sm:$0xff]   ;;  %v2551_v61 = vld [vmem:[#allocation8 + $0x20] sm:$0xff]   ;;  %v2554_v0 = vld [vmem:[#allocation8 + $0x28] sm:$0xff]  }
  0xc1   :  { %2395 = vmatpush3.bf16.msra.mxu0 %v2542_v52  ;;  %v2552_v62 = vld [vmem:[#allocation8 + $0xa0] sm:$0xff]   ;;  %v2555_v1 = vld [vmem:[#allocation8 + $0xa8] sm:$0xff]   ;;  %v2556_v2 = vld [vmem:[#allocation8 + $0x70] sm:$0xff]  }
  0xc2   :  { %2396 = vmatprep.subr.bf16.mxu0 %v2544_v54  ;;  %v2557_v3 = vld [vmem:[#allocation8 + $0x30] sm:$0xff]   ;;  %v2559_v5 = vld [vmem:[#allocation8 + $0x78] sm:$0xff]   ;;  %v2564_v8 = vld [vmem:[#allocation11 + $0x4] ss:$8 sps:$4 sm:$0xff]  }
  0xc3   :  { %2363 = vmatpush3.bf16.msra.mxu1 %v2523_v9  ;;  %v2558_v4 = vld [vmem:[#allocation8 + $0xb0] sm:$0xff]   ;;  %v2560_v6 = vld [vmem:[#allocation8 + $0x38] sm:$0xff]   ;;  %v2588_v9 = vld [vmem:[#allocation10 + $0x4] ss:$8 sps:$4 sm:$0xff]  }
  0xc4   :  { %2364 = vmatprep.subr.bf16.mxu1 %v2524_v10  ;;  %v2561_v7 = vld [vmem:[#allocation8 + $0xb8] sm:$0xff]   ;;  %v2189_v23 = vld [vmem:[%s3370_s3] ss:$0 sm:$0xff] }
  0xc5   :  { %2397 = vmatpush3.bf16.msra.mxu0 %v2545_v55  ;;  %v2567_v54 = vld [vmem:[#allocation11 + $0x14] ss:$8 sps:$4 sm:$0xff]   ;;  %v2574_v19 = vld [vmem:[#allocation11 + $0x40] ss:$8 sps:$4 sm:$0xff]  }
  0xc6   :  { %2398 = vmatprep.subr.bf16.mxu0 %v2547_v57 }
  0xc7   :  { %2365 = vmatpush3.bf16.msra.mxu1 %v2525_v14 }
  0xc8   :  { %2366 = vmatprep.subr.bf16.mxu1 %v2526_v15 }
  0xc9   :  { %2399 = vmatpush3.bf16.msra.mxu0 %v2548_v59 }
  0xca   :  { %2400 = vmatprep.subr.bf16.mxu0 %v2550_v60  ;;  %v2591_v60 = vld [vmem:[#allocation10 + $0x14] ss:$8 sps:$4 sm:$0xff]  }
  0xcb   :  { %2367 = vmatpush3.bf16.msra.mxu1 %v2527_v22 }
  0xcc   :  { %2368 = vmatprep.subr.bf16.mxu1 %v2528_v26 }
  0xcd   :  { %2401 = vmatpush3.bf16.msra.mxu0 %v2551_v61  ;;  %v2565_v61 = vld [vmem:[#allocation11 + $0x10] ss:$8 sps:$4 sm:$0xff]  }
  0xce   :  { %2402 = vmatprep.subr.bf16.mxu0 %v2553_v63 }
  0xcf   :  { %2369 = vmatpush3.bf16.msra.mxu1 %v2529_v27 }
  0xd0   :  { %2458 = vmatprep.subr.bf16.mxu1 %v2530_v30 }
  0xd1   :  { %2403 = vmatpush3.bf16.msra.mxu0 %v2554_v0  ;;  %v2570_v0 = vld [vmem:[#allocation11 + $0x24] ss:$8 sps:$4 sm:$0xff]  }
  0xd2   :  { %454 = vmatmul.mubr.bf16.vlgmr.msra.gmra.mrb[0].mxu1 %v209_v31  ;;  %2404 = vmatprep.subr.bf16.mxu0 %v2556_v2  ;;  %v2594_v2 = vld [vmem:[#allocation10 + $0x24] ss:$8 sps:$4 sm:$0xff]  }
  0xd3   :  { %2459 = vmatpush3.bf16.msra.mxu1 %v2530_v30  ;;  %461 = vmatprep.mubr.bf16.mxu1 %v189_v24 }
  0xd4   :  { %2460 = vmatprep.subr.bf16.mxu1 %v2531_v36 }
  0xd5   :  { %2405 = vmatpush3.bf16.msra.mxu0 %v2557_v3  ;;  %v2568_v3 = vld [vmem:[#allocation11 + $0x20] ss:$8 sps:$4 sm:$0xff]  }
  0xd6   :  { %2406 = vmatprep.subr.bf16.mxu0 %v2559_v5  ;;  %v2592_v5 = vld [vmem:[#allocation10 + $0x20] ss:$8 sps:$4 sm:$0xff]  }
  0xd7   :  { %2461 = vmatpush3.bf16.msra.mxu1 %v2531_v36 }
  0xd8   :  { %2462 = vmatprep.subr.bf16.mxu1 %v2532_v39 }
  0xd9   :  { %2407 = vmatpush3.bf16.msra.mxu0 %v2560_v6  ;;  %v2597_v6 = vld [vmem:[#allocation10 + $0x34] ss:$8 sps:$4 sm:$0xff]  }
  0xda   :  { %462 = vmatmul.mubr.bf16.gmra.mrb[4].mxu1 %v210_v37  ;;  %958 = vmatprep.subr.bf16.mxu0 %v2588_v9  ;;  %v2595_v9 = vld [vmem:[#allocation10 + $0x30] ss:$8 sps:$4 sm:$0xff]  }
  0xdb   :  { %2463 = vmatpush3.bf16.msra.mxu1 %v2532_v39  ;;  %2474 = vmatprep.mubr.bf16.mxu1 %v220_v38 }
  0xdc   :  { %2464 = vmatprep.subr.bf16.mxu1 %v2533_v40 }
  0xdf   :  { %2465 = vmatpush3.bf16.msra.mxu1 %v2533_v40 }
  0xe0   :  { %2466 = vmatprep.subr.bf16.mxu1 %v2534_v41 }
  0xe3   :  { %2467 = vmatpush3.bf16.msra.mxu1 %v2534_v41 }
  0xe4   :  { %2468 = vmatprep.subr.bf16.mxu1 %v2535_v42 }
  0xe7   :  { %2469 = vmatpush3.bf16.msra.mxu1 %v2535_v42 }
  0xe8   :  { %2470 = vmatprep.subr.bf16.mxu1 %v2536_v43 }
  0xeb   :  { %2471 = vmatpush3.bf16.msra.mxu1 %v2536_v43 }
  0xec   :  { %2472 = vmatprep.subr.bf16.mxu1 %v2537_v44 }
  0xef   :  { %2473 = vmatpush3.bf16.msra.mxu1 %v2537_v44 }
  0xf0   :  { %2478 = vmatprep.subr.bf16.mxu1 %v2540_v50 }
  0xf2   :  { %2475 = vmatmul.mubr.bf16.vlgmr.msra.gmra.mrb[8].mxu1 %v221_v47 }
  0xf3   :  { %2479 = vmatpush3.bf16.msra.mxu1 %v2540_v50 }
  0xf4   :  { %2480 = vmatprep.subr.bf16.mxu1 %v2543_v53 }
  0xf7   :  { %2481 = vmatpush3.bf16.msra.mxu1 %v2543_v53  ;;  %v2562_v53 = vld [vmem:[#allocation11] ss:$8 sps:$4 sm:$0xff]  }
  0xf8   :  { %2482 = vmatprep.subr.bf16.mxu1 %v2546_v56 }
  0xfb   :  { %2483 = vmatpush3.bf16.msra.mxu1 %v2546_v56 }
  0xfc   :  { %2484 = vmatprep.subr.bf16.mxu1 %v2549_v58 }
  0xff   :  { %2485 = vmatpush3.bf16.msra.mxu1 %v2549_v58  ;;  %v2586_v58 = vld [vmem:[#allocation10] ss:$8 sps:$4 sm:$0xff]  }
 0x100   :  { %2486 = vmatprep.subr.bf16.mxu1 %v2552_v62 }
 0x103   :  { %2487 = vmatpush3.bf16.msra.mxu1 %v2552_v62  ;;  %v3011_v62 = vmov 0  }
 0x104   :  { %2488 = vmatprep.subr.bf16.mxu1 %v2555_v1 }
 0x107   :  { %2489 = vmatpush3.bf16.msra.mxu1 %v2555_v1  ;;  %v2589_v1 = vld [vmem:[#allocation10 + $0x10] ss:$8 sps:$4 sm:$0xff]  }
 0x108   :  { %2490 = vmatprep.subr.bf16.mxu1 %v2558_v4 }
 0x10b   :  { %2491 = vmatpush3.bf16.msra.mxu1 %v2558_v4  ;;  %v2573_v4 = vld [vmem:[#allocation11 + $0x34] ss:$8 sps:$4 sm:$0xff]  }
 0x10c   :  { %2492 = vmatprep.subr.bf16.mxu1 %v2561_v7 }
 0x10f   :  { %2493 = vmatpush3.bf16.msra.mxu1 %v2561_v7  ;;  %v2571_v7 = vld [vmem:[#allocation11 + $0x30] ss:$8 sps:$4 sm:$0xff]  }
 0x110   :  { %1121 = vmatprep.subr.bf16.mxu1 %v2564_v8  ;;  %v2576_v8 = vld [vmem:[#allocation11 + $0x44] ss:$8 sps:$4 sm:$0xff]  }
 0x1a5   :  { %v2370_v10 = vpop.f32.mrb[0].mxu1 }
 0x1a6   :  { %v2371_v11 = vpop.f32.mrb[1].mxu1 }
 0x1a7   :  { %v2372_v12 = vadd.f32 %v2371_v11, %v2370_v10  ;;  %v2373_v13 = vpop.f32.mrb[2].mxu1  ;;  %v2600_v10 = vld [vmem:[#allocation10 + $0x44] ss:$8 sps:$4 sm:$0xff]   ;;  %v2579_v11 = vld [vmem:[#allocation11 + $0x54] ss:$8 sps:$4 sm:$0xff]  }
 0x1a8   :  { %v2374_v14 = vpop.f32.mrb[3].mxu1 }
 0x1a9   :  { %v2375_v15 = vadd.f32 %v2374_v14, %v2373_v13  ;;  %v456_v26 = vadd.f32 %v2372_v12, %v2189_v23  ;;  %v2598_v12 = vld [vmem:[#allocation10 + $0x40] ss:$8 sps:$4 sm:$0xff]   ;;  %v2603_v13 = vld [vmem:[#allocation10 + $0x54] ss:$8 sps:$4 sm:$0xff]   ;;  %v2577_v14 = vld [vmem:[#allocation11 + $0x50] ss:$8 sps:$4 sm:$0xff]  }
 0x1ab   :  { %v459_v32 = vadd.f32 %v2375_v15, %v2189_v23  ;;  %v2582_v15 = vld [vmem:[#allocation11 + $0x64] ss:$8 sps:$4 sm:$0xff]  }
 0x1ad   :  { %v2376_v16 = vpop.f32.mrb[4].mxu1 }
 0x1ae   :  { %v2377_v17 = vpop.f32.mrb[5].mxu1 }
 0x1af   :  { %v2378_v18 = vadd.f32 %v2377_v17, %v2376_v16  ;;  %v2379_v20 = vpop.f32.mrb[6].mxu1  ;;  %v2601_v16 = vld [vmem:[#allocation10 + $0x50] ss:$8 sps:$4 sm:$0xff]   ;;  %v2580_v17 = vld [vmem:[#allocation11 + $0x60] ss:$8 sps:$4 sm:$0xff]  }
 0x1b0   :  { %v2380_v21 = vpop.f32.mrb[7].mxu1 }
 0x1b1   :  { %v2381_v22 = vadd.f32 %v2380_v21, %v2379_v20  ;;  %v464_v24 = vadd.f32 %v2378_v18, %v2189_v23  ;;  %v2585_v18 = vld [vmem:[#allocation11 + $0x74] ss:$8 sps:$4 sm:$0xff]   ;;  %v2583_v20 = vld [vmem:[#allocation11 + $0x70] ss:$8 sps:$4 sm:$0xff]   ;;  %v184_v21 = vld [vmem:[#allocation5] sm:$0xff] }
 0x1b3   :  { %v467_v29 = vadd.f32 %v2381_v22, %v2189_v23  ;;  %v185_v22 = vld [vmem:[#allocation5 + $0x8] sm:$0xff] }
 0x1b4   :  { %v1011_v23 = vpack.c.bf16 %v185_v22, %v184_v21  ;;  %v2624_v22 = vld [vmem:[#allocation13 + $0x14] ss:$8 sps:$4 sm:$0xff]  }
 0x1c5   :  { %v2476_v25 = vpop.f32.mrb[8].mxu1 }
 0x1c6   :  { %v513_v27 = vadd.f32 %v2476_v25, %v464_v24  ;;  %v504_v28 = vpop.f32.mrb[9].mxu1  ;;  %v186_v24 = vld [vmem:[#allocation5 + $0x10] sm:$0xff]  ;;  %v187_v25 = vld [vmem:[#allocation5 + $0x18] sm:$0xff] }
 0x1c7   :  { %v505_v30 = vadd.f32 %v504_v28, %v456_v26  ;;  %v2477_v31 = vpop.f32.mrb[10].mxu1  ;;  %v1012_v26 = vpack.c.bf16 %v187_v25, %v186_v24  ;;  %v2609_v28 = vld [vmem:[#allocation14 + $0x4] ss:$8 sps:$4 sm:$0xff]  }
 0x1c8   :  { %v516_v33 = vadd.f32 %v2477_v31, %v467_v29  ;;  %v507_v35 = vpop.f32.mrb[11].mxu1  ;;  %v521_v37 = vmax.f32 %v513_v27, 0.0  ;;  %v2606_v27 = vld [vmem:[#allocation10 + $0x64] ss:$8 sps:$4 sm:$0xff]   ;;  %v2604_v29 = vld [vmem:[#allocation10 + $0x60] ss:$8 sps:$4 sm:$0xff]  }
 0x1c9   :  { %v508_v36 = vadd.f32 %v507_v35, %v459_v32  ;;  %v519_v39 = vmax.f32 %v505_v30, 0.0  ;;  %v2607_v30 = vld [vmem:[#allocation14] ss:$8 sps:$4 sm:$0xff]   ;;  %v2612_v31 = vld [vmem:[#allocation10 + $0x74] ss:$8 sps:$4 sm:$0xff]  }
 0x1ca   :  { %v522_v38 = vmax.f32 %v516_v33, 0.0  ;;  %v2615_v32 = vld [vmem:[#allocation14 + $0x14] ss:$8 sps:$4 sm:$0xff]   ;;  %v2610_v33 = vld [vmem:[#allocation10 + $0x70] ss:$8 sps:$4 sm:$0xff]  }
 0x1cb   :  { %v520_v40 = vmax.f32 %v508_v36, 0.0  ;;  %v2613_v35 = vld [vmem:[#allocation14 + $0x10] ss:$8 sps:$4 sm:$0xff]   ;;  %v2618_v36 = vld [vmem:[#allocation13 + $0x4] ss:$8 sps:$4 sm:$0xff]  }
 0x1cc   :  { %v524_v41 = vpack.c.bf16 %v522_v38, %v521_v37  ;;  %v2621_v37 = vld [vmem:[#allocation14 + $0x24] ss:$8 sps:$4 sm:$0xff]   ;;  %v2619_v38 = vld [vmem:[#allocation14 + $0x20] ss:$8 sps:$4 sm:$0xff]  }
 0x1cd   :  { %v523_v42 = vpack.c.bf16 %v520_v40, %v519_v39  ;;  %v2627_v39 = vld [vmem:[#allocation14 + $0x34] ss:$8 sps:$4 sm:$0xff]   ;;  %v2625_v40 = vld [vmem:[#allocation14 + $0x30] ss:$8 sps:$4 sm:$0xff]  }
 0x1ce   :  { %v536_v43 = vshll.u32 %v524_v41, 16  ;;  %v533_v46 = vshrl.u32 %v524_v41, 16 }
 0x1cf   :  { %v526_v44 = vshrl.u32 %v523_v42, 16  ;;  %782 = vmatprep.mubr.bf16.mxu0 %v523_v42  ;;  %v529_v45 = vshll.u32 %v523_v42, 16  ;;  %v2631_v42 = vld [vmem:[#allocation14 + $0x40] ss:$8 sps:$4 sm:$0xff]  }
 0x1d0   :  { %v545_v47 = vrot.slane %v536_v43, 1  ;;  %v535_v57 = vrot.slane %v533_v46, 7 }
 0x1d1   :  { %v528_v48 = vrot.slane %v526_v44, 7  ;;  %v543_v49 = vrot.slane %v529_v45, 1 }
 0x1d2   :  { %v546_v50 = vor.u32 %v545_v47, %v533_v46  ;;  %v538_v63 = vor.u32 %v536_v43, %v535_v57  ;;  %v2639_v43 = vld [vmem:[#allocation14 + $0x54] ss:$8 sps:$4 sm:$0xff]   ;;  %v2643_v46 = vld [vmem:[#allocation14 + $0x60] ss:$8 sps:$4 sm:$0xff]   ;;  %v2681_v57 = vld [vmem:[#allocation14 + $0xc4] ss:$8 sps:$4 sm:$0xff]  }
 0x1d3   :  { %v531_v51 = vor.u32 %v529_v45, %v528_v48  ;;  %v544_v52 = vor.u32 %v543_v49, %v526_v44  ;;  %v2637_v44 = vld [vmem:[#allocation14 + $0x50] ss:$8 sps:$4 sm:$0xff]   ;;  %v2645_v45 = vld [vmem:[#allocation14 + $0x64] ss:$8 sps:$4 sm:$0xff]   ;;  %v2651_v47 = vld [vmem:[#allocation14 + $0x74] ss:$8 sps:$4 sm:$0xff]  }
 0x1d4   :  { %v550_v59 = vsel %vm3247_vm5, %v546_v50, 0  ;;  %v542_v34 = vsel %vm3240_vm2, 0, %v538_v63  ;;  %v2649_v48 = vld [vmem:[#allocation14 + $0x70] ss:$8 sps:$4 sm:$0xff]   ;;  %v2657_v49 = vld [vmem:[#allocation14 + $0x84] ss:$8 sps:$4 sm:$0xff]  }
 0x1d5   :  { %v541_v55 = vsel %vm3240_vm2, 0, %v531_v51  ;;  %v549_v56 = vsel %vm3247_vm5, %v544_v52, 0  ;;  %v2655_v50 = vld [vmem:[#allocation14 + $0x80] ss:$8 sps:$4 sm:$0xff]   ;;  %v2663_v51 = vld [vmem:[#allocation14 + $0x94] ss:$8 sps:$4 sm:$0xff]  }
 0x1d6   :  { %783 = vmatmul.mubr.bf16.vlgmr.msra.gmra.mrb[0].mxu0 %v541_v55  ;;  %2494 = vmatprep.mubr.bf16.mxu1 %v549_v56  ;;  %v2661_v52 = vld [vmem:[#allocation14 + $0x90] ss:$8 sps:$4 sm:$0xff]   ;;  %v2675_v55 = vld [vmem:[#allocation14 + $0xb4] ss:$8 sps:$4 sm:$0xff]   ;;  %v2691_v63 = vld [vmem:[#allocation14 + $0xe0] ss:$8 sps:$4 sm:$0xff]  }
 0x1d7   :  { %790 = vmatprep.mubr.bf16.mxu0 %v524_v41  ;;  %2495 = vmatmul.mubr.bf16.vlgmr.msra.gmra.mrb[12].mxu1 %v550_v59  ;;  %v2633_v41 = vld [vmem:[#allocation14 + $0x44] ss:$8 sps:$4 sm:$0xff]   ;;  %v2673_v56 = vld [vmem:[#allocation14 + $0xb0] ss:$8 sps:$4 sm:$0xff]   ;;  %v2687_v59 = vld [vmem:[#allocation14 + $0xd4] ss:$8 sps:$4 sm:$0xff]  }
 0x1d8   :  { %1122 = vmatpush1.bf16.msra.mxu1 %v2562_v53  ;;  %1153 = vmatprep.mubr.bf16.mxu1 %v3011_v62  ;;  %v2669_v53 = vld [vmem:[#allocation14 + $0xa4] ss:$8 sps:$4 sm:$0xff]  }
 0x1d9   :  { %1123 = vmatprep.subr.bf16.mxu1 %v2567_v54  ;;  %959 = vmatpush1.bf16.msra.mxu0 %v2586_v58  ;;  %v2667_v54 = vld [vmem:[#allocation14 + $0xa0] ss:$8 sps:$4 sm:$0xff]  }
 0x1da   :  { %960 = vmatprep.subr.bf16.mxu0 %v2591_v60  ;;  %v2679_v58 = vld [vmem:[#allocation14 + $0xc0] ss:$8 sps:$4 sm:$0xff]   ;;  %v2685_v60 = vld [vmem:[#allocation14 + $0xd0] ss:$8 sps:$4 sm:$0xff]  }
 0x1dc   :  { %1124 = vmatpush1.bf16.msra.mxu1 %v2565_v61  ;;  %v2693_v61 = vld [vmem:[#allocation14 + $0xe4] ss:$8 sps:$4 sm:$0xff]  }
 0x1dd   :  { %1125 = vmatprep.subr.bf16.mxu1 %v2570_v0  ;;  %961 = vmatpush1.bf16.msra.mxu0 %v2589_v1  ;;  %v2699_v0 = vld [vmem:[#allocation14 + $0xf4] ss:$8 sps:$4 sm:$0xff]   ;;  %v2697_v1 = vld [vmem:[#allocation14 + $0xf0] ss:$8 sps:$4 sm:$0xff]  }
 0x1de   :  { %791 = vmatmul.mubr.bf16.gmra.mrb[4].mxu0 %v542_v34  ;;  %962 = vmatprep.subr.bf16.mxu0 %v2594_v2 }
 0x1df   :  { %990 = vmatprep.mubr.bf16.mxu0 %v3011_v62 }
 0x1e0   :  { %1126 = vmatpush1.bf16.msra.mxu1 %v2568_v3 }
 0x1e1   :  { %1127 = vmatprep.subr.bf16.mxu1 %v2573_v4  ;;  %963 = vmatpush1.bf16.msra.mxu0 %v2592_v5  ;;  %v2214_v4 = vld [vmem:[%s3372_s5] ss:$0 sm:$0xff] }
 0x1e2   :  { %964 = vmatprep.subr.bf16.mxu0 %v2597_v6 }
 0x1e4   :  { %1128 = vmatpush1.bf16.msra.mxu1 %v2571_v7 }
 0x1e5   :  { %1129 = vmatprep.subr.bf16.mxu1 %v2576_v8  ;;  %965 = vmatpush1.bf16.msra.mxu0 %v2595_v9 }
 0x1e6   :  { %966 = vmatprep.subr.bf16.mxu0 %v2600_v10 }
 0x1e8   :  { %1130 = vmatpush1.bf16.msra.mxu1 %v2574_v19 }
 0x1e9   :  { %1131 = vmatprep.subr.bf16.mxu1 %v2579_v11  ;;  %967 = vmatpush1.bf16.msra.mxu0 %v2598_v12 }
 0x1ea   :  { %968 = vmatprep.subr.bf16.mxu0 %v2603_v13 }
 0x1ec   :  { %1132 = vmatpush1.bf16.msra.mxu1 %v2577_v14 }
 0x1ed   :  { %1133 = vmatprep.subr.bf16.mxu1 %v2582_v15  ;;  %969 = vmatpush1.bf16.msra.mxu0 %v2601_v16 }
 0x1ee   :  { %970 = vmatprep.subr.bf16.mxu0 %v2606_v27 }
 0x1f0   :  { %1134 = vmatpush1.bf16.msra.mxu1 %v2580_v17  ;;  %v2616_v17 = vld [vmem:[#allocation13] ss:$8 sps:$4 sm:$0xff]  }
 0x1f1   :  { %1135 = vmatprep.subr.bf16.mxu1 %v2585_v18  ;;  %971 = vmatpush1.bf16.msra.mxu0 %v2604_v29  ;;  %v2630_v29 = vld [vmem:[#allocation13 + $0x24] ss:$8 sps:$4 sm:$0xff]  }
 0x1f2   :  { %972 = vmatprep.subr.bf16.mxu0 %v2612_v31  ;;  %v2628_v31 = vld [vmem:[#allocation13 + $0x20] ss:$8 sps:$4 sm:$0xff]  }
 0x1f4   :  { %1136 = vmatpush1.bf16.msra.mxu1 %v2583_v20 }
 0x1f5   :  { %1639 = vmatprep.subr.bf16.mxu1 %v2609_v28  ;;  %973 = vmatpush1.bf16.msra.mxu0 %v2610_v33  ;;  %v2636_v33 = vld [vmem:[#allocation13 + $0x34] ss:$8 sps:$4 sm:$0xff]  }
 0x1f6   :  { %1382 = vmatprep.subr.bf16.mxu0 %v2618_v36  ;;  %v2634_v36 = vld [vmem:[#allocation13 + $0x30] ss:$8 sps:$4 sm:$0xff]  }
 0x1f7   :  { %1154 = vmatmul.mubr.bf16.vlgmr.msra.gmra.mrb[16].mxu1 %v1011_v23 }
 0x1f8   :  { %1163 = vmatprep.mubr.bf16.mxu1 %v3011_v62  ;;  %1640 = vmatpush1.bf16.msra.mxu1 %v2607_v30 }
 0x1f9   :  { %1641 = vmatprep.subr.bf16.mxu1 %v2615_v32 }
 0x1fc   :  { %1642 = vmatpush1.bf16.msra.mxu1 %v2613_v35  ;;  %v868_v35 = vlaneseq }
 0x1fd   :  { %1643 = vmatprep.subr.bf16.mxu1 %v2621_v37  ;;  %v2642_v37 = vld [vmem:[#allocation13 + $0x44] ss:$8 sps:$4 sm:$0xff]  }
 0x1ff   :  { %1164 = vmatmul.mubr.bf16.gmra.mrb[20].mxu1 %v1012_v26  ;;  %v2622_v26 = vld [vmem:[#allocation13 + $0x10] ss:$8 sps:$4 sm:$0xff]  }
 0x200   :  { %1644 = vmatpush1.bf16.msra.mxu1 %v2619_v38  ;;  %v869_v38 = vshrl.u32 %v868_v35, 7 }
 0x201   :  { %1645 = vmatprep.subr.bf16.mxu1 %v2627_v39  ;;  %v2640_v39 = vld [vmem:[#allocation13 + $0x40] ss:$8 sps:$4 sm:$0xff]  }
 0x204   :  { %1646 = vmatpush1.bf16.msra.mxu1 %v2625_v40  ;;  %v2648_v40 = vld [vmem:[#allocation13 + $0x54] ss:$8 sps:$4 sm:$0xff]  }
 0x205   :  { %1647 = vmatprep.subr.bf16.mxu1 %v2633_v41  ;;  %v3287_v41 = vsub.s32 0, %v869_v38 }
 0x208   :  { %1648 = vmatpush1.bf16.msra.mxu1 %v2631_v42  ;;  %v1029_v42 = vld [vmem:[%s3376_s9] sm:$0x3] }
 0x209   :  { %1649 = vmatprep.subr.bf16.mxu1 %v2639_v43  ;;  %v3292_v43 = vsub.s32 1, %v869_v38 }
 0x20c   :  { %1650 = vmatpush1.bf16.msra.mxu1 %v2637_v44  ;;  %v2646_v44 = vld [vmem:[#allocation13 + $0x50] ss:$8 sps:$4 sm:$0xff]  }
 0x20d   :  { %1651 = vmatprep.subr.bf16.mxu1 %v2645_v45  ;;  %v2654_v45 = vld [vmem:[#allocation13 + $0x64] ss:$8 sps:$4 sm:$0xff]  }
 0x210   :  { %1652 = vmatpush1.bf16.msra.mxu1 %v2643_v46  ;;  %v1034_v46 = vrot.slane %v1029_v42, %v3287_v41 }
 0x211   :  { %1653 = vmatprep.subr.bf16.mxu1 %v2651_v47  ;;  %v1038_v47 = vrot.slane %v1029_v42, %v3292_v43 }
 0x214   :  { %1654 = vmatpush1.bf16.msra.mxu1 %v2649_v48  ;;  %v2652_v48 = vld [vmem:[#allocation13 + $0x60] ss:$8 sps:$4 sm:$0xff]  }
 0x215   :  { %1655 = vmatprep.subr.bf16.mxu1 %v2657_v49 }
 0x218   :  { %1656 = vmatpush1.bf16.msra.mxu1 %v2655_v50  ;;  %v2660_v50 = vld [vmem:[#allocation13 + $0x74] ss:$8 sps:$4 sm:$0xff]  }
 0x219   :  { %1657 = vmatprep.subr.bf16.mxu1 %v2663_v51 }
 0x21c   :  { %1658 = vmatpush1.bf16.msra.mxu1 %v2661_v52 }
 0x21d   :  { %1659 = vmatprep.subr.bf16.mxu1 %v2669_v53 }
 0x220   :  { %1660 = vmatpush1.bf16.msra.mxu1 %v2667_v54 }
 0x221   :  { %1661 = vmatprep.subr.bf16.mxu1 %v2675_v55 }
 0x224   :  { %1662 = vmatpush1.bf16.msra.mxu1 %v2673_v56 }
 0x225   :  { %1663 = vmatprep.subr.bf16.mxu1 %v2681_v57  ;;  %v2658_v57 = vld [vmem:[#allocation13 + $0x70] ss:$8 sps:$4 sm:$0xff]  }
 0x228   :  { %1664 = vmatpush1.bf16.msra.mxu1 %v2679_v58 }
 0x229   :  { %1665 = vmatprep.subr.bf16.mxu1 %v2687_v59  ;;  %v2666_v59 = vld [vmem:[#allocation13 + $0x84] ss:$8 sps:$4 sm:$0xff]  }
 0x22c   :  { %1666 = vmatpush1.bf16.msra.mxu1 %v2685_v60 }
 0x22d   :  { %1667 = vmatprep.subr.bf16.mxu1 %v2693_v61 }
 0x230   :  { %1668 = vmatpush1.bf16.msra.mxu1 %v2691_v63  ;;  %v2664_v63 = vld [vmem:[#allocation13 + $0x80] ss:$8 sps:$4 sm:$0xff]  }
 0x231   :  { %1669 = vmatprep.subr.bf16.mxu1 %v2699_v0 }
 0x234   :  { %1670 = vmatpush1.bf16.msra.mxu1 %v2697_v1  ;;  %v2672_v1 = vld [vmem:[#allocation13 + $0x94] ss:$8 sps:$4 sm:$0xff]  }
 0x2a9   :  { %v2408_v2 = vpop.f32.mrb[0].mxu0 }
 0x2aa   :  { %v2409_v3 = vpop.f32.mrb[1].mxu0  ;;  %v2496_v34 = vpop.f32.mrb[12].mxu1 }
 0x2ab   :  { %v2410_v5 = vadd.f32 %v2409_v3, %v2408_v2  ;;  %v2411_v6 = vpop.f32.mrb[2].mxu0  ;;  %v833_v7 = vpop.f32.mrb[13].mxu1 }
 0x2ac   :  { %v2412_v8 = vpop.f32.mrb[3].mxu0  ;;  %v2497_v9 = vpop.f32.mrb[14].mxu1 }
 0x2ad   :  { %v785_v10 = vadd.f32 %v2410_v5, %v2214_v4  ;;  %v2413_v19 = vadd.f32 %v2412_v8, %v2411_v6  ;;  %v836_v11 = vpop.f32.mrb[15].mxu1 }
 0x2af   :  { %v3274_v12 = vadd.f32 %v833_v7, %v785_v10  ;;  %v788_v13 = vadd.f32 %v2413_v19, %v2214_v4  ;;  %v2670_v7 = vld [vmem:[#allocation13 + $0x90] ss:$8 sps:$4 sm:$0xff]  }
 0x2b1   :  { %v3276_v14 = vadd.f32 %v836_v11, %v788_v13  ;;  %v2414_v15 = vpop.f32.mrb[4].mxu0  ;;  %v2676_v11 = vld [vmem:[#allocation13 + $0xa0] ss:$8 sps:$4 sm:$0xff]   ;;  %v2684_v13 = vld [vmem:[#allocation13 + $0xb4] ss:$8 sps:$4 sm:$0xff]  }
 0x2b2   :  { %v2415_v16 = vpop.f32.mrb[5].mxu0 }
 0x2b3   :  { %v848_v18 = vpack.c.bf16 %v3276_v14, %v3274_v12  ;;  %v2416_v20 = vadd.f32 %v2415_v16, %v2414_v15  ;;  %v2417_v21 = vpop.f32.mrb[6].mxu0  ;;  %v2682_v15 = vld [vmem:[#allocation13 + $0xb0] ss:$8 sps:$4 sm:$0xff]   ;;  %v2690_v16 = vld [vmem:[#allocation13 + $0xc4] ss:$8 sps:$4 sm:$0xff]  }
 0x2b4   :  { %v2418_v23 = vpop.f32.mrb[7].mxu0 }
 0x2b5   :  { %v793_v24 = vadd.f32 %v2416_v20, %v2214_v4  ;;  %v2419_v25 = vadd.f32 %v2418_v23, %v2417_v21  ;;  %991 = vmatmul.mubr.bf16.vlgmr.msra.gmra.mrb[8].mxu0 %v848_v18  ;;  %v2696_v18 = vld [vmem:[#allocation13 + $0xd4] ss:$8 sps:$4 sm:$0xff]   ;;  %v2694_v20 = vld [vmem:[#allocation13 + $0xd0] ss:$8 sps:$4 sm:$0xff]   ;;  %v2702_v21 = vld [vmem:[#allocation13 + $0xe4] ss:$8 sps:$4 sm:$0xff]  }
 0x2b6   :  { %1383 = vmatpush1.bf16.msra.mxu0 %v2616_v17  ;;  %1000 = vmatprep.mubr.bf16.mxu0 %v3011_v62  ;;  %v2688_v17 = vld [vmem:[#allocation13 + $0xc0] ss:$8 sps:$4 sm:$0xff]   ;;  %v2705_v23 = vld [vmem:[#allocation13 + $0xf4] ss:$8 sps:$4 sm:$0xff]  }
 0x2b7   :  { %v3281_v27 = vadd.f32 %v2496_v34, %v793_v24  ;;  %v796_v28 = vadd.f32 %v2419_v25, %v2214_v4  ;;  %1384 = vmatprep.subr.bf16.mxu0 %v2624_v22  ;;  %v2700_v22 = vld [vmem:[#allocation13 + $0xe0] ss:$8 sps:$4 sm:$0xff]   ;;  %v2703_v24 = vld [vmem:[#allocation13 + $0xf0] ss:$8 sps:$4 sm:$0xff]  }
 0x2b8   :  { %v866_v25 = vld [vmem:[%s3374_s7] sm:$0x3] }
 0x2b9   :  { %v3283_v30 = vadd.f32 %v2497_v9, %v796_v28  ;;  %v2678_v9 = vld [vmem:[#allocation13 + $0xa4] ss:$8 sps:$4 sm:$0xff]  }
 0x2ba   :  { %1385 = vmatpush1.bf16.msra.mxu0 %v2622_v26  ;;  %v871_v26 = vrot.slane %v866_v25, %v3287_v41 }
 0x2bb   :  { %1386 = vmatprep.subr.bf16.mxu0 %v2630_v29  ;;  %v849_v32 = vpack.c.bf16 %v3283_v30, %v3281_v27  ;;  %v875_v29 = vrot.slane %v866_v25, %v3292_v43 }
 0x2bd   :  { %1001 = vmatmul.mubr.bf16.gmra.mrb[12].mxu0 %v849_v32 }
 0x2be   :  { %1387 = vmatpush1.bf16.msra.mxu0 %v2628_v31 }
 0x2bf   :  { %1388 = vmatprep.subr.bf16.mxu0 %v2636_v33 }
 0x2c2   :  { %1389 = vmatpush1.bf16.msra.mxu0 %v2634_v36 }
 0x2c3   :  { %1390 = vmatprep.subr.bf16.mxu0 %v2642_v37 }
 0x2c6   :  { %1391 = vmatpush1.bf16.msra.mxu0 %v2640_v39 }
 0x2c7   :  { %1392 = vmatprep.subr.bf16.mxu0 %v2648_v40 }
 0x2ca   :  { %1393 = vmatpush1.bf16.msra.mxu0 %v2646_v44  ;;  %v1155_v49 = vpop.f32.mrb[16].mxu1 }
 0x2cb   :  { %1394 = vmatprep.subr.bf16.mxu0 %v2654_v45  ;;  %v1156_v51 = vadd.f32 %v1155_v49, %v1034_v46  ;;  %v1157_v52 = vpop.f32.mrb[17].mxu1 }
 0x2cc   :  { %v1158_v53 = vadd.f32 %v1157_v52, %v1038_v47  ;;  %v1159_v54 = vpop.f32.mrb[18].mxu1 }
 0x2cd   :  { %v1160_v55 = vadd.f32 %v1159_v54, %v1034_v46  ;;  %v1161_v56 = vpop.f32.mrb[19].mxu1 }
 0x2ce   :  { %1395 = vmatpush1.bf16.msra.mxu0 %v2652_v48  ;;  %v1162_v58 = vadd.f32 %v1161_v56, %v1038_v47 }
 0x2cf   :  { %1396 = vmatprep.subr.bf16.mxu0 %v2660_v50  ;;  %v1174_v60 = vpack.c.bf16 %v1160_v55, %v1156_v51 }
 0x2d0   :  { %v1175_v61 = vpack.c.bf16 %v1162_v58, %v1158_v53  ;;  %v1467_v53 = vld [vmem:[%s3380_s13] sm:$0x3] }
 0x2d1   :  { %v1472_v54 = vrot.slane %v1467_v53, %v3287_v41  ;;  %v1476_v55 = vrot.slane %v1467_v53, %v3292_v43 }
 0x2d2   :  { %1397 = vmatpush1.bf16.msra.mxu0 %v2658_v57  ;;  %1671 = vmatprep.mubr.bf16.mxu1 %v1175_v61  ;;  %v1165_v0 = vpop.f32.mrb[20].mxu1 }
 0x2d3   :  { %1398 = vmatprep.subr.bf16.mxu0 %v2666_v59  ;;  %1672 = vmatmul.mubr.bf16.vlgmr.msra.gmra.mrb[24].mxu1 %v1174_v60  ;;  %v1166_v2 = vadd.f32 %v1165_v0, %v1034_v46  ;;  %v1167_v3 = vpop.f32.mrb[21].mxu1 }
 0x2d4   :  { %1414 = vmatprep.mubr.bf16.mxu0 %v1175_v61  ;;  %v1168_v34 = vadd.f32 %v1167_v3, %v1038_v47  ;;  %v1169_v4 = vpop.f32.mrb[22].mxu1 }
 0x2d5   :  { %v1170_v5 = vadd.f32 %v1169_v4, %v1034_v46  ;;  %v1171_v6 = vpop.f32.mrb[23].mxu1 }
 0x2d6   :  { %1399 = vmatpush1.bf16.msra.mxu0 %v2664_v63  ;;  %v1172_v8 = vadd.f32 %v1171_v6, %v1038_v47 }
 0x2d7   :  { %1400 = vmatprep.subr.bf16.mxu0 %v2672_v1  ;;  %v1176_v10 = vpack.c.bf16 %v1170_v5, %v1166_v2 }
 0x2d8   :  { %v1177_v19 = vpack.c.bf16 %v1172_v8, %v1168_v34 }
 0x2da   :  { %1401 = vmatpush1.bf16.msra.mxu0 %v2670_v7  ;;  %1681 = vmatprep.mubr.bf16.mxu1 %v1177_v19 }
 0x2db   :  { %1402 = vmatprep.subr.bf16.mxu0 %v2678_v9  ;;  %1682 = vmatmul.mubr.bf16.gmra.mrb[28].mxu1 %v1176_v10 }
 0x2dc   :  { %1918 = vmatprep.mubr.bf16.mxu1 %v3011_v62 }
 0x2de   :  { %1403 = vmatpush1.bf16.msra.mxu0 %v2676_v11  ;;  %v1210_v11 = vld [vmem:[%s3378_s11] sm:$0x3] }
 0x2df   :  { %1404 = vmatprep.subr.bf16.mxu0 %v2684_v13  ;;  %v1215_v13 = vrot.slane %v1210_v11, %v3287_v41 }
 0x2e2   :  { %1405 = vmatpush1.bf16.msra.mxu0 %v2682_v15 }
 0x2e3   :  { %1406 = vmatprep.subr.bf16.mxu0 %v2690_v16  ;;  %v1219_v16 = vrot.slane %v1210_v11, %v3292_v43 }
 0x2e6   :  { %1407 = vmatpush1.bf16.msra.mxu0 %v2688_v17 }
 0x2e7   :  { %1408 = vmatprep.subr.bf16.mxu0 %v2696_v18 }
 0x2ea   :  { %1409 = vmatpush1.bf16.msra.mxu0 %v2694_v20 }
 0x2eb   :  { %1410 = vmatprep.subr.bf16.mxu0 %v2702_v21 }
 0x2ee   :  { %1411 = vmatpush1.bf16.msra.mxu0 %v2700_v22 }
 0x2ef   :  { %1412 = vmatprep.subr.bf16.mxu0 %v2705_v23 }
 0x2f2   :  { %1413 = vmatpush1.bf16.msra.mxu0 %v2703_v24 }
 0x2f5   :  { %1415 = vmatmul.mubr.bf16.vlgmr.msra.gmra.mrb[16].mxu0 %v1174_v60 }
 0x2f6   :  { %1424 = vmatprep.mubr.bf16.mxu0 %v1177_v19 }
 0x2fd   :  { %1425 = vmatmul.mubr.bf16.gmra.mrb[20].mxu0 %v1176_v10 }
 0x388   :  { %v992_v28 = vpop.f32.mrb[8].mxu0 }
 0x389   :  { %v994_v31 = vpop.f32.mrb[9].mxu0  ;;  %v3302_v33 = vadd.f32 %v992_v28, %v871_v26 }
 0x38a   :  { %v996_v32 = vpop.f32.mrb[10].mxu0  ;;  %v995_v37 = vadd.f32 %v994_v31, %v875_v29 }
 0x38b   :  { %v3304_v35 = vadd.f32 %v996_v32, %v871_v26  ;;  %v998_v36 = vpop.f32.mrb[11].mxu0 }
 0x38c   :  { %v999_v38 = vadd.f32 %v998_v36, %v875_v29 }
 0x38d   :  { %v1692_v39 = vpack.c.bf16 %v3304_v35, %v3302_v33 }
 0x38e   :  { %v1693_v40 = vpack.c.bf16 %v999_v38, %v995_v37 }
 0x390   :  { %v1002_v42 = vpop.f32.mrb[12].mxu0  ;;  %1736 = vmatprep.mubr.bf16.mxu0 %v1693_v40 }
 0x391   :  { %v1004_v44 = vpop.f32.mrb[13].mxu0  ;;  %v1003_v47 = vadd.f32 %v1002_v42, %v871_v26 }
 0x392   :  { %v1005_v45 = vadd.f32 %v1004_v44, %v875_v29  ;;  %v1006_v46 = vpop.f32.mrb[14].mxu0 }
 0x393   :  { %v1007_v48 = vadd.f32 %v1006_v46, %v871_v26  ;;  %v1008_v49 = vpop.f32.mrb[15].mxu0 }
 0x394   :  { %v1009_v50 = vadd.f32 %v1008_v49, %v875_v29 }
 0x395   :  { %v1694_v51 = vpack.c.bf16 %v1007_v48, %v1003_v47 }
 0x396   :  { %v1695_v52 = vpack.c.bf16 %v1009_v50, %v1005_v45 }
 0x3a6   :  { %v1673_v56 = vpop.f32.mrb[24].mxu1 }
 0x3a7   :  { %v1674_v57 = vadd.f32 %v1673_v56, %v1472_v54  ;;  %v1675_v58 = vpop.f32.mrb[25].mxu1 }
 0x3a8   :  { %v1676_v59 = vadd.f32 %v1675_v58, %v1476_v55  ;;  %v1677_v60 = vpop.f32.mrb[26].mxu1 }
 0x3a9   :  { %v1678_v61 = vadd.f32 %v1677_v60, %v1472_v54  ;;  %v1679_v63 = vpop.f32.mrb[27].mxu1 }
 0x3aa   :  { %v1680_v0 = vadd.f32 %v1679_v63, %v1476_v55 }
 0x3ab   :  { %v1700_v1 = vpack.c.bf16 %v1678_v61, %v1674_v57 }
 0x3ac   :  { %v1701_v2 = vpack.c.bf16 %v1680_v0, %v1676_v59 }
 0x3ae   :  { %v1683_v3 = vpop.f32.mrb[28].mxu1 }
 0x3af   :  { %v1684_v34 = vadd.f32 %v1683_v3, %v1472_v54  ;;  %v1685_v4 = vpop.f32.mrb[29].mxu1 }
 0x3b0   :  { %v1686_v5 = vadd.f32 %v1685_v4, %v1476_v55  ;;  %v1687_v6 = vpop.f32.mrb[30].mxu1 }
 0x3b1   :  { %v1688_v7 = vadd.f32 %v1687_v6, %v1472_v54  ;;  %v1689_v8 = vpop.f32.mrb[31].mxu1 }
 0x3b2   :  { %v1690_v9 = vadd.f32 %v1689_v8, %v1476_v55 }
 0x3b3   :  { %v1702_v10 = vpack.c.bf16 %v1688_v7, %v1684_v34 }
 0x3b4   :  { %v1703_v19 = vpack.c.bf16 %v1690_v9, %v1686_v5 }
 0x3b6   :  { %1886 = vmatprep.subr.bf16.mxu1 %v1703_v19  ;;  %v2706_v19 = vld [vmem:[#allocation16 + $0x40] sm:$0xff]  }
 0x3b7   :  { %1887 = vmatpush1.bf16.msra.mxu1 %v1702_v10 }
 0x3c8   :  { %v1416_v15 = vpop.f32.mrb[16].mxu0 }
 0x3c9   :  { %v1418_v17 = vpop.f32.mrb[17].mxu0  ;;  %v1417_v20 = vadd.f32 %v1416_v15, %v1215_v13 }
 0x3ca   :  { %v1420_v18 = vpop.f32.mrb[18].mxu0  ;;  %v1419_v23 = vadd.f32 %v1418_v17, %v1219_v16 }
 0x3cb   :  { %v1421_v21 = vadd.f32 %v1420_v18, %v1215_v13  ;;  %v1422_v22 = vpop.f32.mrb[19].mxu0 }
 0x3cc   :  { %v1423_v24 = vadd.f32 %v1422_v22, %v1219_v16  ;;  %v2707_v22 = vld [vmem:[#allocation16] sm:$0xff]  }
 0x3cd   :  { %v1696_v25 = vpack.c.bf16 %v1421_v21, %v1417_v20 }
 0x3ce   :  { %v1697_v26 = vpack.c.bf16 %v1423_v24, %v1419_v23  ;;  %v2708_v24 = vld [vmem:[#allocation16 + $0x48] sm:$0xff]  }
 0x3d0   :  { %v1426_v28 = vpop.f32.mrb[20].mxu0  ;;  %1704 = vmatprep.subr.bf16.mxu0 %v1697_v26  ;;  %v2709_v26 = vld [vmem:[#allocation16 + $0x8] sm:$0xff]  }
 0x3d1   :  { %v1428_v29 = vpop.f32.mrb[21].mxu0  ;;  %1705 = vmatpush1.bf16.xpose.msra.mxu0 %v1696_v25  ;;  %v1427_v32 = vadd.f32 %v1426_v28, %v1215_v13  ;;  %v2710_v28 = vld [vmem:[#allocation16 + $0x50] sm:$0xff]  }
 0x3d2   :  { %v1430_v31 = vpop.f32.mrb[22].mxu0  ;;  %v1429_v37 = vadd.f32 %v1428_v29, %v1219_v16 }
 0x3d3   :  { %v1431_v36 = vadd.f32 %v1430_v31, %v1215_v13  ;;  %v1432_v41 = vpop.f32.mrb[23].mxu0 }
 0x3d4   :  { %v1433_v38 = vadd.f32 %v1432_v41, %v1219_v16 }
 0x3d5   :  { %v1698_v43 = vpack.c.bf16 %v1431_v36, %v1427_v32  ;;  %v2711_v36 = vld [vmem:[#allocation16 + $0x10] sm:$0xff]  }
 0x3d6   :  { %v1699_v40 = vpack.c.bf16 %v1433_v38, %v1429_v37  ;;  %v2712_v37 = vld [vmem:[#allocation16 + $0x58] sm:$0xff]  }
 0x3d7   :  { %v2713_v38 = vld [vmem:[#allocation16 + $0x18] sm:$0xff]  }
 0x3d8   :  { %1737 = vmatmul.mubr.bf16.vlgmr.msra.gmra.mrb[24].mxu0 %v1692_v39  ;;  %1745 = vmatprep.subr.bf16.mxu0 %v1699_v40  ;;  %v2715_v40 = vld [vmem:[#allocation16 + $0x20] sm:$0xff]  }
 0x3d9   :  { %1746 = vmatpush1.bf16.xpose.msra.mxu0 %v1698_v43  ;;  %1777 = vmatprep.mubr.bf16.mxu0 %v1695_v52  ;;  %v2714_v43 = vld [vmem:[#allocation16 + $0x60] sm:$0xff]  }
 0x3da   :  { %1840 = vmatprep.subr.bf16.mxu0 %v1701_v2 }
 0x3e0   :  { %1778 = vmatmul.mubr.bf16.vlgmr.msra.gmra.mrb[28].mxu0 %v1694_v51 }
 0x3e1   :  { %1841 = vmatpush1.bf16.msra.mxu0 %v1700_v1  ;;  %1872 = vmatprep.mubr.bf16.mxu0 %v3011_v62 }
 0x3e2   :  { %2430 = vmatprep.subr.bf16.mxu0 %v2706_v19 }
 0x4ab   :  { %v1738_v42 = vpop.f32.mrb[24].mxu0 }
 0x4ac   :  { %v1786_v44 = vmul.f32 0.0625, %v1738_v42  ;;  %v1740_v45 = vpop.f32.mrb[25].mxu0  ;;  %v2716_v42 = vld [vmem:[#allocation16 + $0x68] sm:$0xff]  }
 0x4ad   :  { %v1741_v46 = vpop.f32.mrb[26].mxu0  ;;  %v2718_v45 = vld [vmem:[#allocation16 + $0x70] sm:$0xff]  }
 0x4ae   :  { %v1787_v47 = vmul.f32 0.0625, %v1741_v46  ;;  %v1743_v48 = vpop.f32.mrb[27].mxu0  ;;  %v1791_v49 = vsel %vm1790_vm6, %v1786_v44, -inf  ;;  %v2719_v46 = vld [vmem:[#allocation16 + $0x30] sm:$0xff]  }
 0x4af   :  { %1792 = vmax.xlane.f32.xlu0 %v1791_v49  ;;  %v2721_v48 = vld [vmem:[#allocation16 + $0x38] sm:$0xff]  }
 0x4b0   :  { %v1794_v33 = vsel %vm1790_vm6, %v1787_v47, -inf }
 0x4b3   :  { %1795 = vmax.xlane.f32.xlu0 %v1794_v33  ;;  %v1779_v35 = vpop.f32.mrb[28].mxu0 }
 0x4b4   :  { %v1788_v39 = vmul.f32 0.0625, %v1779_v35  ;;  %v1781_v50 = vpop.f32.mrb[29].mxu0 }
 0x4b5   :  { %v1782_v51 = vpop.f32.mrb[30].mxu0 }
 0x4b6   :  { %v1789_v52 = vmul.f32 0.0625, %v1782_v51  ;;  %v1784_v53 = vpop.f32.mrb[31].mxu0  ;;  %v1797_v62 = vsel %vm1790_vm6, %v1788_v39, -inf }
 0x4b7   :  { %1798 = vmax.xlane.f32.xlu1 %v1797_v62 }
 0x4b8   :  { %v1800_v54 = vsel %vm1790_vm6, %v1789_v52, -inf }
 0x4bb   :  { %1801 = vmax.xlane.f32.xlu1 %v1800_v54 }
 0x53c   :  { %v1793_v55 = vpop.xlane.xlu0 %1792 }
 0x53d   :  { %v1803_v56 = vsub.f32 %v1786_v44, %v1793_v55  ;;  %v2717_v44 = vld [vmem:[#allocation16 + $0x28] sm:$0xff]  }
 0x53f   :  { %v1807_v57 = vmul.f32 1.442695, %v1803_v56 }
 0x540   :  { %v1796_v58 = vpop.xlane.xlu0 %1795 }
 0x541   :  { %2722 = vpow2.f32 %v1807_v57  ;;  %v1804_v59 = vsub.f32 %v1787_v47, %v1796_v58  ;;  %v2720_v47 = vld [vmem:[#allocation16 + $0x78] sm:$0xff]   ;;  %v2337_v58 = vld [vmem:[%s3382_s15] ss:$0 sm:$0xff]  ;;  %s3012_s15 = smov [#allocation17]  }
 0x542   :  { %s2159_s26 = sshll.u32 %s3012_s15, 4  ;;  %s2160_s26 = int_to_ptr.vmem [resolvable:$true] %s2159_s26 }
 0x543   :  { %v1809_v60 = vmul.f32 1.442695, %v1804_v59  ;;  %s2940_s6 = scalar_lea.vmem %s2160_s26, 512  ;;  %p2945_p3 = scmp.lt.s32.totalorder %s2160_s26, %s2160_s26 }
 0x544   :  { %v1799_v61 = vpop.xlane.xlu1 %1798  ;;  %p2941_p2 = scmp.ne.s32.totalorder %s2160_s26, %s2940_s6  ;;  %p2946_p4 = scmp.lt.s32.totalorder %s2940_s6, %s2940_s6 }
 0x545   :  { %2724 = vpow2.f32 %v1809_v60  ;;  %v1805_v63 = vsub.f32 %v1788_v39, %v1799_v61 }
 0x546   :  { %p2947_p5 = por %p2946_p4, %p2945_p3 }
 0x547   :  { %v1811_v0 = vmul.f32 1.442695, %v1805_v63 }
 0x548   :  { %v1802_v1 = vpop.xlane.xlu1 %1801  ;;  %p2948_p6 = pnand %p2947_p5, %p2941_p2 }
 0x549   :  { %2726 = vpow2.f32 %v1811_v0  ;;  %v1806_v2 = vsub.f32 %v1789_v52, %v1802_v1 }
 0x54b   :  { %v2723_v3 = vpop.eup %2722  ;;  %v1813_v34 = vmul.f32 1.442695, %v1806_v2 }
 0x54c   :  { %v1815_v4 = vsel %vm1790_vm6, %v2723_v3, 0.0 }
 0x54d   :  { %2728 = vpow2.f32 %v1813_v34  ;;  %1816 = vadd.xlane.f32.xlu0 %v1815_v4  ;;  %v2738_v34 = vld [vmem:[#allocation2] sm:$0xff] }
 0x54f   :  { %v2725_v5 = vpop.eup %2724 }
 0x550   :  { %v1818_v6 = vsel %vm1790_vm6, %v2725_v5, 0.0 }
 0x551   :  { %1819 = vadd.xlane.f32.xlu1 %v1818_v6 }
 0x553   :  { %v2727_v7 = vpop.eup %2726 }
 0x554   :  { %v1821_v8 = vsel %vm1790_vm6, %v2727_v7, 0.0 }
 0x555   :  { %1822 = vadd.xlane.f32.xlu0 %v1821_v8  ;;  %v2739_v8 = vld [vmem:[#allocation2 + $0x8] sm:$0xff] }
 0x557   :  { %v2729_v9 = vpop.eup %2728 }
 0x558   :  { %v1824_v10 = vsel %vm1790_vm6, %v2729_v9, 0.0 }
 0x559   :  { %1825 = vadd.xlane.f32.xlu1 %v1824_v10 }
 0x5da   :  { %v1817_v11 = vpop.xlane.xlu0 %1816 }
 0x5db   :  { %2730 = vrcp.f32 %v1817_v11 }
 0x5de   :  { %v1820_v13 = vpop.xlane.xlu1 %1819 }
 0x5df   :  { %2732 = vrcp.f32 %v1820_v13 }
 0x5e2   :  { %v1823_v15 = vpop.xlane.xlu0 %1822 }
 0x5e3   :  { %2734 = vrcp.f32 %v1823_v15 }
 0x5e5   :  { %v2731_v17 = vpop.eup %2730 }
 0x5e6   :  { %v1826_v16 = vpop.xlane.xlu1 %1825  ;;  %v1831_v20 = vmul.f32 %v2731_v17, %v2723_v3 }
 0x5e7   :  { %2736 = vrcp.f32 %v1826_v16 }
 0x5e9   :  { %v2733_v18 = vpop.eup %2732 }
 0x5ea   :  { %v1832_v21 = vmul.f32 %v2733_v18, %v2725_v5 }
 0x5ec   :  { %v1835_v23 = vpack.c.bf16 %v1832_v21, %v1831_v20 }
 0x5ed   :  { %v2735_v25 = vpop.eup %2734 }
 0x5ee   :  { %2335 = vmatmul.mubr.msk.bf16.vlgmr.msra.gmra.mrb[32].mxu0 %vm1790_vm6, %v1835_v23  ;;  %v1833_v31 = vmul.f32 %v2735_v25, %v2727_v7 }
 0x5ef   :  { %2431 = vmatpush3.bf16.msra.mxu0 %v2707_v22 }
 0x5f0   :  { %2432 = vmatprep.subr.bf16.mxu0 %v2708_v24 }
 0x5f1   :  { %v2737_v29 = vpop.eup %2736 }
 0x5f2   :  { %v1834_v32 = vmul.f32 %v2737_v29, %v2729_v9 }
 0x5f3   :  { %2433 = vmatpush3.bf16.msra.mxu0 %v2709_v26  ;;  %v2741_v26 = vld [vmem:[#allocation2 + $0x18] sm:$0xff] }
 0x5f4   :  { %v1836_v41 = vpack.c.bf16 %v1834_v32, %v1833_v31  ;;  %2434 = vmatprep.subr.bf16.mxu0 %v2710_v28 }
 0x5f6   :  { %2336 = vmatmul.mubr.msk.bf16.vlgmr.msra.gmra.mrb[32].mxu1 %vm1790_vm6, %v1836_v41 }
 0x5f7   :  { %2435 = vmatpush3.bf16.msra.mxu0 %v2711_v36 }
 0x5f8   :  { %2436 = vmatprep.subr.bf16.mxu0 %v2712_v37 }
 0x5fb   :  { %2437 = vmatpush3.bf16.msra.mxu0 %v2713_v38 }
 0x5fc   :  { %2438 = vmatprep.subr.bf16.mxu0 %v2714_v43 }
 0x5ff   :  { %2439 = vmatpush3.bf16.msra.mxu0 %v2715_v40 }
 0x600   :  { %2440 = vmatprep.subr.bf16.mxu0 %v2716_v42 }
 0x603   :  { %2441 = vmatpush3.bf16.msra.mxu0 %v2717_v44 }
 0x604   :  { %2442 = vmatprep.subr.bf16.mxu0 %v2718_v45 }
 0x607   :  { %2443 = vmatpush3.bf16.msra.mxu0 %v2719_v46 }
 0x608   :  { %2444 = vmatprep.subr.bf16.mxu0 %v2720_v47 }
 0x60b   :  { %2445 = vmatpush3.bf16.msra.mxu0 %v2721_v48 }
 0x6c1   :  { %v1874_v49 = vpop.f32.mrb[32].mxu0 }
 0x6c2   :  { %v1876_v33 = vpop.f32.mrb[33].mxu0 }
 0x6c3   :  { %v1878_v35 = vpop.f32.mrb[34].mxu0 }
 0x6c4   :  { %v1929_v39 = vpack.c.bf16 %v1878_v35, %v1874_v49  ;;  %v1880_v50 = vpop.f32.mrb[35].mxu0 }
 0x6c5   :  { %v1930_v51 = vpack.c.bf16 %v1880_v50, %v1876_v33 }
 0x6c7   :  { %2100 = vmatprep.mubr.bf16.mxu0 %v1930_v51 }
 0x6c8   :  { %2101 = vmatmul.mubr.bf16.vlgmr.msra.gmra.mrb[36].mxu0 %v1929_v39 }
 0x6c9   :  { %v1920_v52 = vpop.f32.mrb[32].mxu1 }
 0x6ca   :  { %v1922_v53 = vpop.f32.mrb[33].mxu1 }
 0x6cb   :  { %v1924_v62 = vpop.f32.mrb[34].mxu1 }
 0x6cc   :  { %v1931_v54 = vpack.c.bf16 %v1924_v62, %v1920_v52  ;;  %v1926_v55 = vpop.f32.mrb[35].mxu1 }
 0x6cd   :  { %v1932_v56 = vpack.c.bf16 %v1926_v55, %v1922_v53 }
 0x6cf   :  { %2108 = vmatprep.mubr.bf16.mxu0 %v1932_v56 }
 0x6d0   :  { %2109 = vmatmul.mubr.bf16.gmra.mrb[40].mxu0 %v1931_v54 }
 0x79b   :  { %v2446_v57 = vpop.f32.mrb[36].mxu0 }
 0x79c   :  { %v2447_v59 = vpop.f32.mrb[37].mxu0 }
 0x79d   :  { %v2448_v60 = vadd.f32 %v2447_v59, %v2446_v57  ;;  %v2449_v61 = vpop.f32.mrb[38].mxu0 }
 0x79e   :  { %v2450_v63 = vpop.f32.mrb[39].mxu0 }
 0x79f   :  { %v2103_v0 = vadd.f32 %v2448_v60, %v2337_v58  ;;  %v2451_v1 = vadd.f32 %v2450_v63, %v2449_v61 }
 0x7a1   :  { %v2117_v2 = vadd.f32 %v2103_v0, %v3274_v12  ;;  %v2106_v3 = vadd.f32 %v2451_v1, %v2337_v58 }
 0x7a3   :  { %v2121_v4 = vadd.f32 %v2738_v34, %v2117_v2  ;;  %v2118_v5 = vadd.f32 %v2106_v3, %v3276_v14  ;;  %v2452_v6 = vpop.f32.mrb[40].mxu0  ;;  %v2740_v14 = vld [vmem:[#allocation2 + $0x10] sm:$0xff] }
 0x7a4   :  { %v2453_v7 = vpop.f32.mrb[41].mxu0 }
 0x7a5   :  { %2125 = vst [vmem:[#allocation17] sm:$0xff] %v2121_v4  ;;  %v2122_v9 = vadd.f32 %v2739_v8, %v2118_v5  ;;  %v2454_v10 = vadd.f32 %v2453_v7, %v2452_v6  ;;  %v2455_v19 = vpop.f32.mrb[42].mxu0  ;;  %v2138_v11 = vmul.f32 %v2121_v4, %v2121_v4 }
 0x7a6   :  { %v2456_v13 = vpop.f32.mrb[43].mxu0 }
 0x7a7   :  { %v2129_v15 = vadd.f32 %v2122_v9, %v2121_v4  ;;  %v2139_v16 = vmul.f32 %v2122_v9, %v2122_v9  ;;  %2126 = vst [vmem:[#allocation17 + $0x8] sm:$0xff] %v2122_v9  ;;  %v2111_v17 = vadd.f32 %v2454_v10, %v2337_v58  ;;  %v2457_v18 = vadd.f32 %v2456_v13, %v2455_v19 }
 0x7a9   :  { %v2142_v12 = vadd.f32 %v2139_v16, %v2138_v11  ;;  %v2119_v20 = vadd.f32 %v2111_v17, %v3281_v27  ;;  %v2114_v21 = vadd.f32 %v2457_v18, %v2337_v58 }
 0x7ab   :  { %v2123_v22 = vadd.f32 %v2740_v14, %v2119_v20  ;;  %v2120_v23 = vadd.f32 %v2114_v21, %v3283_v30 }
 0x7ad   :  { %v2130_v24 = vadd.f32 %v2129_v15, %v2123_v22  ;;  %v2140_v25 = vmul.f32 %v2123_v22, %v2123_v22  ;;  %2127 = vst [vmem:[#allocation17 + $0x10] sm:$0xff] %v2123_v22  ;;  %v2124_v28 = vadd.f32 %v2741_v26, %v2120_v23 }
 0x7af   :  { %v2143_v29 = vadd.f32 %v2142_v12, %v2140_v25  ;;  %v2131_v31 = vadd.f32 %v2130_v24, %v2124_v28  ;;  %v2141_v32 = vmul.f32 %v2124_v28, %v2124_v28  ;;  %2128 = vst [vmem:[#allocation17 + $0x18] sm:$0xff] %v2124_v28 }
 0x7b0   :  { %2951 = shalt.err (!%p2948_p6)
}
 0x7b1   :  { %s3399_s17 = sld [smem:[#allocation29_spill]] }
 0x7b7   :  { %s2952_s27 = scalar_lea.hbm %s3399_s17, 512 }
 0x7b8   :  { %p2953_p7 = scmp.ne.s32.totalorder %s3399_s17, %s2952_s27  ;;  %p2956_p8 = scmp.lt.u32.totalorder %s2952_s27, %s3399_s17 }
 0x7ba   :  { %p2958_p9 = pnand %p2956_p8, %p2953_p7 }
 0x7bc   :  { %2961 = shalt.err (!%p2958_p9)
}
 0x7bd   :  { %2165 = dma.vmem_to_hbm [thread:$0]  %s2160_s26, 512, %s3399_s17, [#allocation4], %s2999_s20, %s2999_s20, %s3000_s21   ;;  %v2132_v27 = vrot.slane %v2131_v31, 4  ;;  %v2144_v30 = vadd.f32 %v2143_v29, %v2141_v32 }
 0x7be   :  { %s3013_s10 = smov [#allocation18]  }
 0x7bf   :  { %v2133_v36 = vadd.f32 %v2132_v27, %v2131_v31  ;;  %v2145_v41 = vrot.slane %v2144_v30, 4  ;;  %s2172_s30 = sshll.u32 %s3013_s10, 4  ;;  %s2173_s30 = int_to_ptr.vmem [resolvable:$true] %s2172_s30 }
 0x7c0   :  { %s2962_s20 = scalar_lea.vmem %s2173_s30, 32  ;;  %p2967_p11 = scmp.lt.s32.totalorder %s2173_s30, %s2173_s30 }
 0x7c1   :  { %v2134_v37 = vrot.slane %v2133_v36, 2  ;;  %v2146_v38 = vadd.f32 %v2145_v41, %v2144_v30  ;;  %p2963_p10 = scmp.ne.s32.totalorder %s2173_s30, %s2962_s20  ;;  %p2968_p12 = scmp.lt.s32.totalorder %s2962_s20, %s2962_s20 }
 0x7c3   :  { %v2135_v43 = vadd.f32 %v2134_v37, %v2133_v36  ;;  %v2147_v40 = vrot.slane %v2146_v38, 2  ;;  %p2969_p13 = por %p2968_p12, %p2967_p11 }
 0x7c5   :  { %v2136_v42 = vrot.slane %v2135_v43, 1  ;;  %v2148_v44 = vadd.f32 %v2147_v40, %v2146_v38  ;;  %p2970_p0 = pnand %p2969_p13, %p2963_p10 }
 0x7c7   :  { %v2149_v45 = vrot.slane %v2148_v44, 1  ;;  %v2137_v46 = vadd.f32 %v2136_v42, %v2135_v43 }
 0x7c9   :  { %v2150_v47 = vadd.f32 %v2149_v45, %v2148_v44 }
 0x7cb   :  { %v2152_v48 = vsel %vm206_vm0, %v2137_v46, %v2150_v47 }
 0x7cc   :  { %2153 = vst [vmem:[#allocation18] sm:$0x3] %v2152_v48 }
 0x7cd   :  { %2973 = shalt.err (!%p2970_p0)
}
 0x7ce   :  { %s3400_s28 = sld [smem:[#allocation30_spill]] }
 0x7d4   :  { %s2974_s3 = scalar_lea.hbm %s3400_s28, 32 }
 0x7d5   :  { %p2975_p1 = scmp.ne.s32.totalorder %s3400_s28, %s2974_s3  ;;  %p2978_p2 = scmp.lt.u32.totalorder %s2974_s3, %s3400_s28 }
 0x7d7   :  { %p2980_p3 = pnand %p2978_p2, %p2975_p1 }
 0x7d9   :  { %2983 = shalt.err (!%p2980_p3)
}
 0x7da   :  { %2175 = dma.vmem_to_hbm [thread:$0]  %s2173_s30, 32, %s3400_s28, [#allocation19]  }
 0x7db   :  { %2994 = dma.done.wait [#allocation4], 512  }
 0x7dc   :  { %2995 = vsyncadd [#allocation4], 4294966784 }
 0x7dd   :  { %2996 = dma.done.wait [#allocation19], 32  }
 0x7de   :  { %2997 = vsyncadd [#allocation19], 4294967264 }
 0x7df   :  { %2182 = vsyncpa [#allocation3], 1 }
 0x7e0   :  { %2183 = vsyncpa [#allocation6], 1 }
 0x7e1   :  { %2184 = vsyncpa [#allocation9], 1 }
 0x7e2   :  { %2185 = vsyncpa [#allocation12], 1 }
 0x7e3   :  { %2186 = vsyncpa [#allocation15], 1 }
 0x7e4   :  { %2187 = vsyncpa [#allocation4], 1 }
 0x7e5   :  { %2188 = vsyncpa [#allocation19], 1 }

</bundles_post_ra>
